<compile_context>
chip_gen: v6e
topology: v6e:2x2x1
jax: 0.10.0
libtpu: 0.0.40
codegen_flags: <defaults>
</compile_context>

<pallas_src>
import jax
import jax.numpy as jnp
from jax.experimental import pallas as pl
from jax.experimental.pallas import tpu as pltpu


# ----------------------------- Fused network kernel ---------------------------
def make_stock_lstm_kernel(num_layers, T, Bp, H):
    """Kernel args: x_ref, (wih_bf16, whh_bf16, bias_f32) * L, fcw, fcb, out."""

    def kernel(*args):
        x_ref = args[0]                                   # (T*Bp, D_in) f32, time-major rows
        w_refs = args[1:1 + 3 * num_layers]               # per-layer (d,4H) bf16,(H,4H) bf16,(1,4H) f32
        fcw_ref = args[1 + 3 * num_layers]                # (1, H) f32
        fcb_ref = args[2 + 3 * num_layers]                # (1, 1) f32
        out_ref = args[3 + 3 * num_layers]                # (Bp, 1) f32

        h = None
        hs = []
        for layer in range(num_layers):
            wih = w_refs[3 * layer][...]                  # bf16 (d_in, 4H)
            whh = w_refs[3 * layer + 1][...]              # bf16 (H, 4H)
            bias = w_refs[3 * layer + 2][...]             # f32  (1, 4H)

            # Hoisted input projection over ALL timesteps at once (bf16 MXU,
            # f32 accumulation). Inter-layer sequence stays as traced values.
            if layer == 0:
                seq = x_ref[...].astype(jnp.bfloat16)                 # (T*Bp, D)
            else:
                seq = jnp.concatenate(hs, axis=0).astype(jnp.bfloat16)  # (T*Bp, H)
            xp = jnp.dot(seq, wih, preferred_element_type=jnp.float32) + bias  # (T*Bp, 4H) f32

            h = jnp.zeros((Bp, H), jnp.float32)
            c = jnp.zeros((Bp, H), jnp.float32)
            last_layer = layer == num_layers - 1
            hs = []

            # Serial recurrence, statically unrolled (T small). Per-step slices
            # start at multiples of Bp=8 sublanes -> aligned whole-tile access.
            for t in range(T):
                gates = xp[t * Bp:(t + 1) * Bp, :] + jnp.dot(
                    h.astype(jnp.bfloat16), whh,
                    preferred_element_type=jnp.float32)               # (Bp, 4H) f32
                # Whole-vreg transcendentals (EUP); slice activated gates after.
                sig = jax.nn.sigmoid(gates)
                tah = jnp.tanh(gates)
                i_g = sig[:, 0 * H:1 * H]
                f_g = sig[:, 1 * H:2 * H]
                g_g = tah[:, 2 * H:3 * H]
                o_g = sig[:, 3 * H:4 * H]
                c = f_g * c + i_g * g_g
                h = o_g * jnp.tanh(c)
                if not last_layer:
                    hs.append(h)                                      # traced value, no store

        # Fused Linear(H, 1): lane reduction instead of a 1-column MXU matmul.
        out_ref[...] = (
            jnp.sum(h * fcw_ref[...], axis=-1, keepdims=True) + fcb_ref[...]
        )

    return kernel


# ------------------------------ Full forward pass -----------------------------
def prepare_params(params):
    """One-time weight prep: transpose, bf16-cast MXU operands, combine biases."""
    prepared = {"lstm": []}
    for (w_ih, w_hh, b_ih, b_hh) in params["lstm"]:
        prepared["lstm"].append((
            w_ih.T.astype(jnp.bfloat16),          # (d_in, 4H) bf16
            w_hh.T.astype(jnp.bfloat16),          # (H, 4H)   bf16
            (b_ih + b_hh)[None, :].astype(jnp.float32),  # (1, 4H) f32
        ))
    prepared["fc_w_row"] = params["fc_w"].reshape(1, -1).astype(jnp.float32)  # (1, H)
    prepared["fc_b_col"] = params["fc_b"].reshape(1, 1).astype(jnp.float32)   # (1, 1)
    return prepared


@jax.jit
def stock_lstm_forward(x, prepared):
    """x: (B, T, input_size) batch_first, like the PyTorch module."""
    B, T, D = x.shape
    H = prepared["lstm"][0][1].shape[0]
    num_layers = len(prepared["lstm"])

    # Pad batch to a full sublane group so all per-step tiles are aligned.
    Bp = ((B + 7) // 8) * 8
    x_pad = jnp.pad(x, ((0, Bp - B), (0, 0), (0, 0)))
    # Time-major flat rows: row index = t*Bp + b.
    x_flat = jnp.transpose(x_pad, (1, 0, 2)).reshape(T * Bp, D)

    flat_weights = []
    for (wih_t, whh_t, b) in prepared["lstm"]:
        flat_weights += [wih_t, whh_t, b]

    n_in = 1 + len(flat_weights) + 2
    kernel = make_stock_lstm_kernel(num_layers, T, Bp, H)

    out_pad = pl.pallas_call(
        kernel,
        out_shape=jax.ShapeDtypeStruct((Bp, 1), jnp.float32),
        in_specs=[pl.BlockSpec(memory_space=pltpu.MemorySpace.VMEM)] * n_in,
        out_specs=pl.BlockSpec(memory_space=pltpu.MemorySpace.VMEM),
    )(x_flat, *flat_weights, prepared["fc_w_row"], prepared["fc_b_col"])
    return out_pad[:B]


# ------------------------------ Pure-JAX reference ----------------------------
def reference_forward(x, params):
    B, T, _ = x.shape
    h_seq = x
    for (w_ih, w_hh, b_ih, b_hh) in params["lstm"]:
        H = w_hh.shape[1]
        h = jnp.zeros((B, H), jnp.float32)
        c = jnp.zeros((B, H), jnp.float32)
        outs = []
        for t in range(T):
            gates = h_seq[:, t, :] @ w_ih.T + h @ w_hh.T + b_ih + b_hh
            i = jax.nn.sigmoid(gates[:, 0 * H:1 * H])
            f = jax.nn.sigmoid(gates[:, 1 * H:2 * H])
            g = jnp.tanh(gates[:, 2 * H:3 * H])
            o = jax.nn.sigmoid(gates[:, 3 * H:4 * H])
            c = f * c + i * g
            h = o * jnp.tanh(c)
            outs.append(h)
        h_seq = jnp.stack(outs, axis=1)
    return h_seq[:, -1, :] @ params["fc_w"].T + params["fc_b"]


# ------------------------------------ Main ------------------------------------
def make_params(key, input_size, hidden_size, num_layers):
    """Deterministic synthetic parameters with PyTorch nn.LSTM shapes."""
    params = {"lstm": []}
    scale = 0.1
    for layer in range(num_layers):
        d_in = input_size if layer == 0 else hidden_size
        key, k1, k2, k3, k4 = jax.random.split(key, 5)
        w_ih = scale * jax.random.normal(k1, (4 * hidden_size, d_in), jnp.float32)
        w_hh = scale * jax.random.normal(k2, (4 * hidden_size, hidden_size), jnp.float32)
        b_ih = scale * jax.random.normal(k3, (4 * hidden_size,), jnp.float32)
        b_hh = scale * jax.random.normal(k4, (4 * hidden_size,), jnp.float32)
        params["lstm"].append((w_ih, w_hh, b_ih, b_hh))
    key, k1, k2 = jax.random.split(key, 3)
    params["fc_w"] = scale * jax.random.normal(k1, (1, hidden_size), jnp.float32)
    params["fc_b"] = scale * jax.random.normal(k2, (1,), jnp.float32)
    return params


if __name__ == "__main__":
    batch, seq_len, input_size, hidden_size, num_layers = 2, 8, 4, 32, 2

    key = jax.random.PRNGKey(0)
    key, kx = jax.random.split(key)
    x = jax.random.normal(kx, (batch, seq_len, input_size), jnp.float32)
    params = make_params(key, input_size, hidden_size, num_layers)
    prepared = prepare_params(params)   # one-time weight prep (outside forward)

    out = stock_lstm_forward(x, prepared)
    out = jax.block_until_ready(out)

    ref = reference_forward(x, params)
    assert out.shape == (batch, 1), out.shape
    # bf16 MXU operands (f32 accumulation / gate math) -> slightly looser tol.
    assert jnp.allclose(out, ref, atol=2e-2, rtol=2e-2), (out, ref)

    print("KERNEL_OK")
</pallas_src>

<mosaic_0001>
module attributes {stable_mosaic.version = 11 : i64} {
  func.func @kernel(%arg0: memref<64x4xf32, #tpu.memory_space<vmem>>, %arg1: memref<4x128xbf16, #tpu.memory_space<vmem>>, %arg2: memref<32x128xbf16, #tpu.memory_space<vmem>>, %arg3: memref<1x128xf32, #tpu.memory_space<vmem>>, %arg4: memref<32x128xbf16, #tpu.memory_space<vmem>>, %arg5: memref<32x128xbf16, #tpu.memory_space<vmem>>, %arg6: memref<1x128xf32, #tpu.memory_space<vmem>>, %arg7: memref<1x32xf32, #tpu.memory_space<vmem>>, %arg8: memref<1x1xf32, #tpu.memory_space<vmem>>, %arg9: memref<8x1xf32, #tpu.memory_space<vmem>>) attributes {dimension_semantics = [], scalar_prefetch = 0 : i64, scratch_operands = 0 : i64, tpu.core_type = #tpu.core_type<tc>} {
    %c0 = arith.constant 0 : index
    %c0_0 = arith.constant 0 : index
    %0 = vector.load %arg1[%c0, %c0_0] : memref<4x128xbf16, #tpu.memory_space<vmem>>, vector<4x128xbf16>
    %c0_1 = arith.constant 0 : index
    %c0_2 = arith.constant 0 : index
    %1 = vector.load %arg2[%c0_1, %c0_2] : memref<32x128xbf16, #tpu.memory_space<vmem>>, vector<32x128xbf16>
    %c0_3 = arith.constant 0 : index
    %c0_4 = arith.constant 0 : index
    %2 = vector.load %arg3[%c0_3, %c0_4] : memref<1x128xf32, #tpu.memory_space<vmem>>, vector<1x128xf32>
    %c0_5 = arith.constant 0 : index
    %c0_6 = arith.constant 0 : index
    %3 = vector.load %arg0[%c0_5, %c0_6] : memref<64x4xf32, #tpu.memory_space<vmem>>, vector<64x4xf32>
    %4 = arith.truncf %3 : vector<64x4xf32> to vector<64x4xbf16>
    %cst = arith.constant dense<0.000000e+00> : vector<64x128xf32>
    %5 = tpu.matmul %4, %0, %cst {dimension_numbers = #tpu.dot_dimension_numbers<[1], [0], [0], [1], [0, 0, 1, 1], [], []>} : vector<64x4xbf16>, vector<4x128xbf16>, vector<64x128xf32> -> vector<64x128xf32>
    %6 = vector.broadcast %2 : vector<1x128xf32> to vector<64x128xf32>
    %7 = arith.addf %5, %6 : vector<64x128xf32>
    %cst_7 = arith.constant 0.000000e+00 : f32
    %8 = vector.broadcast %cst_7 : f32 to vector<8x32xf32>
    %cst_8 = arith.constant 0.000000e+00 : f32
    %9 = vector.broadcast %cst_8 : f32 to vector<8x32xf32>
    %10 = vector.extract_strided_slice %7 {offsets = [0, 0], sizes = [8, 128], strides = [1, 1]} : vector<64x128xf32> to vector<8x128xf32>
    %11 = arith.truncf %8 : vector<8x32xf32> to vector<8x32xbf16>
    %cst_9 = arith.constant dense<0.000000e+00> : vector<8x128xf32>
    %12 = tpu.matmul %11, %1, %cst_9 {dimension_numbers = #tpu.dot_dimension_numbers<[1], [0], [0], [1], [0, 0, 1, 1], [], []>} : vector<8x32xbf16>, vector<32x128xbf16>, vector<8x128xf32> -> vector<8x128xf32>
    %13 = arith.addf %10, %12 : vector<8x128xf32>
    %14 = arith.negf %13 : vector<8x128xf32>
    %15 = math.exp %14 : vector<8x128xf32>
    %cst_10 = arith.constant 1.000000e+00 : f32
    %16 = vector.broadcast %cst_10 : f32 to vector<8x128xf32>
    %17 = arith.addf %16, %15 : vector<8x128xf32>
    %18 = arith.divf %16, %17 : vector<8x128xf32>
    %19 = math.tanh %13 : vector<8x128xf32>
    %20 = vector.extract_strided_slice %18 {offsets = [0, 0], sizes = [8, 32], strides = [1, 1]} : vector<8x128xf32> to vector<8x32xf32>
    %21 = vector.extract_strided_slice %18 {offsets = [0, 32], sizes = [8, 32], strides = [1, 1]} : vector<8x128xf32> to vector<8x32xf32>
    %22 = vector.extract_strided_slice %19 {offsets = [0, 64], sizes = [8, 32], strides = [1, 1]} : vector<8x128xf32> to vector<8x32xf32>
    %23 = vector.extract_strided_slice %18 {offsets = [0, 96], sizes = [8, 32], strides = [1, 1]} : vector<8x128xf32> to vector<8x32xf32>
    %24 = arith.mulf %21, %9 : vector<8x32xf32>
    %25 = arith.mulf %20, %22 : vector<8x32xf32>
    %26 = arith.addf %24, %25 : vector<8x32xf32>
    %27 = math.tanh %26 : vector<8x32xf32>
    %28 = arith.mulf %23, %27 : vector<8x32xf32>
    %29 = vector.extract_strided_slice %7 {offsets = [8, 0], sizes = [8, 128], strides = [1, 1]} : vector<64x128xf32> to vector<8x128xf32>
    %30 = arith.truncf %28 : vector<8x32xf32> to vector<8x32xbf16>
    %cst_11 = arith.constant dense<0.000000e+00> : vector<8x128xf32>
    %31 = tpu.matmul %30, %1, %cst_11 {dimension_numbers = #tpu.dot_dimension_numbers<[1], [0], [0], [1], [0, 0, 1, 1], [], []>} : vector<8x32xbf16>, vector<32x128xbf16>, vector<8x128xf32> -> vector<8x128xf32>
    %32 = arith.addf %29, %31 : vector<8x128xf32>
    %33 = arith.negf %32 : vector<8x128xf32>
    %34 = math.exp %33 : vector<8x128xf32>
    %cst_12 = arith.constant 1.000000e+00 : f32
    %35 = vector.broadcast %cst_12 : f32 to vector<8x128xf32>
    %36 = arith.addf %35, %34 : vector<8x128xf32>
    %37 = arith.divf %35, %36 : vector<8x128xf32>
    %38 = math.tanh %32 : vector<8x128xf32>
    %39 = vector.extract_strided_slice %37 {offsets = [0, 0], sizes = [8, 32], strides = [1, 1]} : vector<8x128xf32> to vector<8x32xf32>
    %40 = vector.extract_strided_slice %37 {offsets = [0, 32], sizes = [8, 32], strides = [1, 1]} : vector<8x128xf32> to vector<8x32xf32>
    %41 = vector.extract_strided_slice %38 {offsets = [0, 64], sizes = [8, 32], strides = [1, 1]} : vector<8x128xf32> to vector<8x32xf32>
    %42 = vector.extract_strided_slice %37 {offsets = [0, 96], sizes = [8, 32], strides = [1, 1]} : vector<8x128xf32> to vector<8x32xf32>
    %43 = arith.mulf %40, %26 : vector<8x32xf32>
    %44 = arith.mulf %39, %41 : vector<8x32xf32>
    %45 = arith.addf %43, %44 : vector<8x32xf32>
    %46 = math.tanh %45 : vector<8x32xf32>
    %47 = arith.mulf %42, %46 : vector<8x32xf32>
    %48 = vector.extract_strided_slice %7 {offsets = [16, 0], sizes = [8, 128], strides = [1, 1]} : vector<64x128xf32> to vector<8x128xf32>
    %49 = arith.truncf %47 : vector<8x32xf32> to vector<8x32xbf16>
    %cst_13 = arith.constant dense<0.000000e+00> : vector<8x128xf32>
    %50 = tpu.matmul %49, %1, %cst_13 {dimension_numbers = #tpu.dot_dimension_numbers<[1], [0], [0], [1], [0, 0, 1, 1], [], []>} : vector<8x32xbf16>, vector<32x128xbf16>, vector<8x128xf32> -> vector<8x128xf32>
    %51 = arith.addf %48, %50 : vector<8x128xf32>
    %52 = arith.negf %51 : vector<8x128xf32>
    %53 = math.exp %52 : vector<8x128xf32>
    %cst_14 = arith.constant 1.000000e+00 : f32
    %54 = vector.broadcast %cst_14 : f32 to vector<8x128xf32>
    %55 = arith.addf %54, %53 : vector<8x128xf32>
    %56 = arith.divf %54, %55 : vector<8x128xf32>
    %57 = math.tanh %51 : vector<8x128xf32>
    %58 = vector.extract_strided_slice %56 {offsets = [0, 0], sizes = [8, 32], strides = [1, 1]} : vector<8x128xf32> to vector<8x32xf32>
    %59 = vector.extract_strided_slice %56 {offsets = [0, 32], sizes = [8, 32], strides = [1, 1]} : vector<8x128xf32> to vector<8x32xf32>
    %60 = vector.extract_strided_slice %57 {offsets = [0, 64], sizes = [8, 32], strides = [1, 1]} : vector<8x128xf32> to vector<8x32xf32>
    %61 = vector.extract_strided_slice %56 {offsets = [0, 96], sizes = [8, 32], strides = [1, 1]} : vector<8x128xf32> to vector<8x32xf32>
    %62 = arith.mulf %59, %45 : vector<8x32xf32>
    %63 = arith.mulf %58, %60 : vector<8x32xf32>
    %64 = arith.addf %62, %63 : vector<8x32xf32>
    %65 = math.tanh %64 : vector<8x32xf32>
    %66 = arith.mulf %61, %65 : vector<8x32xf32>
    %67 = vector.extract_strided_slice %7 {offsets = [24, 0], sizes = [8, 128], strides = [1, 1]} : vector<64x128xf32> to vector<8x128xf32>
    %68 = arith.truncf %66 : vector<8x32xf32> to vector<8x32xbf16>
    %cst_15 = arith.constant dense<0.000000e+00> : vector<8x128xf32>
    %69 = tpu.matmul %68, %1, %cst_15 {dimension_numbers = #tpu.dot_dimension_numbers<[1], [0], [0], [1], [0, 0, 1, 1], [], []>} : vector<8x32xbf16>, vector<32x128xbf16>, vector<8x128xf32> -> vector<8x128xf32>
    %70 = arith.addf %67, %69 : vector<8x128xf32>
    %71 = arith.negf %70 : vector<8x128xf32>
    %72 = math.exp %71 : vector<8x128xf32>
    %cst_16 = arith.constant 1.000000e+00 : f32
    %73 = vector.broadcast %cst_16 : f32 to vector<8x128xf32>
    %74 = arith.addf %73, %72 : vector<8x128xf32>
    %75 = arith.divf %73, %74 : vector<8x128xf32>
    %76 = math.tanh %70 : vector<8x128xf32>
    %77 = vector.extract_strided_slice %75 {offsets = [0, 0], sizes = [8, 32], strides = [1, 1]} : vector<8x128xf32> to vector<8x32xf32>
    %78 = vector.extract_strided_slice %75 {offsets = [0, 32], sizes = [8, 32], strides = [1, 1]} : vector<8x128xf32> to vector<8x32xf32>
    %79 = vector.extract_strided_slice %76 {offsets = [0, 64], sizes = [8, 32], strides = [1, 1]} : vector<8x128xf32> to vector<8x32xf32>
    %80 = vector.extract_strided_slice %75 {offsets = [0, 96], sizes = [8, 32], strides = [1, 1]} : vector<8x128xf32> to vector<8x32xf32>
    %81 = arith.mulf %78, %64 : vector<8x32xf32>
    %82 = arith.mulf %77, %79 : vector<8x32xf32>
    %83 = arith.addf %81, %82 : vector<8x32xf32>
    %84 = math.tanh %83 : vector<8x32xf32>
    %85 = arith.mulf %80, %84 : vector<8x32xf32>
    %86 = vector.extract_strided_slice %7 {offsets = [32, 0], sizes = [8, 128], strides = [1, 1]} : vector<64x128xf32> to vector<8x128xf32>
    %87 = arith.truncf %85 : vector<8x32xf32> to vector<8x32xbf16>
    %cst_17 = arith.constant dense<0.000000e+00> : vector<8x128xf32>
    %88 = tpu.matmul %87, %1, %cst_17 {dimension_numbers = #tpu.dot_dimension_numbers<[1], [0], [0], [1], [0, 0, 1, 1], [], []>} : vector<8x32xbf16>, vector<32x128xbf16>, vector<8x128xf32> -> vector<8x128xf32>
    %89 = arith.addf %86, %88 : vector<8x128xf32>
    %90 = arith.negf %89 : vector<8x128xf32>
    %91 = math.exp %90 : vector<8x128xf32>
    %cst_18 = arith.constant 1.000000e+00 : f32
    %92 = vector.broadcast %cst_18 : f32 to vector<8x128xf32>
    %93 = arith.addf %92, %91 : vector<8x128xf32>
    %94 = arith.divf %92, %93 : vector<8x128xf32>
    %95 = math.tanh %89 : vector<8x128xf32>
    %96 = vector.extract_strided_slice %94 {offsets = [0, 0], sizes = [8, 32], strides = [1, 1]} : vector<8x128xf32> to vector<8x32xf32>
    %97 = vector.extract_strided_slice %94 {offsets = [0, 32], sizes = [8, 32], strides = [1, 1]} : vector<8x128xf32> to vector<8x32xf32>
    %98 = vector.extract_strided_slice %95 {offsets = [0, 64], sizes = [8, 32], strides = [1, 1]} : vector<8x128xf32> to vector<8x32xf32>
    %99 = vector.extract_strided_slice %94 {offsets = [0, 96], sizes = [8, 32], strides = [1, 1]} : vector<8x128xf32> to vector<8x32xf32>
    %100 = arith.mulf %97, %83 : vector<8x32xf32>
    %101 = arith.mulf %96, %98 : vector<8x32xf32>
    %102 = arith.addf %100, %101 : vector<8x32xf32>
    %103 = math.tanh %102 : vector<8x32xf32>
    %104 = arith.mulf %99, %103 : vector<8x32xf32>
    %105 = vector.extract_strided_slice %7 {offsets = [40, 0], sizes = [8, 128], strides = [1, 1]} : vector<64x128xf32> to vector<8x128xf32>
    %106 = arith.truncf %104 : vector<8x32xf32> to vector<8x32xbf16>
    %cst_19 = arith.constant dense<0.000000e+00> : vector<8x128xf32>
    %107 = tpu.matmul %106, %1, %cst_19 {dimension_numbers = #tpu.dot_dimension_numbers<[1], [0], [0], [1], [0, 0, 1, 1], [], []>} : vector<8x32xbf16>, vector<32x128xbf16>, vector<8x128xf32> -> vector<8x128xf32>
    %108 = arith.addf %105, %107 : vector<8x128xf32>
    %109 = arith.negf %108 : vector<8x128xf32>
    %110 = math.exp %109 : vector<8x128xf32>
    %cst_20 = arith.constant 1.000000e+00 : f32
    %111 = vector.broadcast %cst_20 : f32 to vector<8x128xf32>
    %112 = arith.addf %111, %110 : vector<8x128xf32>
    %113 = arith.divf %111, %112 : vector<8x128xf32>
    %114 = math.tanh %108 : vector<8x128xf32>
    %115 = vector.extract_strided_slice %113 {offsets = [0, 0], sizes = [8, 32], strides = [1, 1]} : vector<8x128xf32> to vector<8x32xf32>
    %116 = vector.extract_strided_slice %113 {offsets = [0, 32], sizes = [8, 32], strides = [1, 1]} : vector<8x128xf32> to vector<8x32xf32>
    %117 = vector.extract_strided_slice %114 {offsets = [0, 64], sizes = [8, 32], strides = [1, 1]} : vector<8x128xf32> to vector<8x32xf32>
    %118 = vector.extract_strided_slice %113 {offsets = [0, 96], sizes = [8, 32], strides = [1, 1]} : vector<8x128xf32> to vector<8x32xf32>
    %119 = arith.mulf %116, %102 : vector<8x32xf32>
    %120 = arith.mulf %115, %117 : vector<8x32xf32>
    %121 = arith.addf %119, %120 : vector<8x32xf32>
    %122 = math.tanh %121 : vector<8x32xf32>
    %123 = arith.mulf %118, %122 : vector<8x32xf32>
    %124 = vector.extract_strided_slice %7 {offsets = [48, 0], sizes = [8, 128], strides = [1, 1]} : vector<64x128xf32> to vector<8x128xf32>
    %125 = arith.truncf %123 : vector<8x32xf32> to vector<8x32xbf16>
    %cst_21 = arith.constant dense<0.000000e+00> : vector<8x128xf32>
    %126 = tpu.matmul %125, %1, %cst_21 {dimension_numbers = #tpu.dot_dimension_numbers<[1], [0], [0], [1], [0, 0, 1, 1], [], []>} : vector<8x32xbf16>, vector<32x128xbf16>, vector<8x128xf32> -> vector<8x128xf32>
    %127 = arith.addf %124, %126 : vector<8x128xf32>
    %128 = arith.negf %127 : vector<8x128xf32>
    %129 = math.exp %128 : vector<8x128xf32>
    %cst_22 = arith.constant 1.000000e+00 : f32
    %130 = vector.broadcast %cst_22 : f32 to vector<8x128xf32>
    %131 = arith.addf %130, %129 : vector<8x128xf32>
    %132 = arith.divf %130, %131 : vector<8x128xf32>
    %133 = math.tanh %127 : vector<8x128xf32>
    %134 = vector.extract_strided_slice %132 {offsets = [0, 0], sizes = [8, 32], strides = [1, 1]} : vector<8x128xf32> to vector<8x32xf32>
    %135 = vector.extract_strided_slice %132 {offsets = [0, 32], sizes = [8, 32], strides = [1, 1]} : vector<8x128xf32> to vector<8x32xf32>
    %136 = vector.extract_strided_slice %133 {offsets = [0, 64], sizes = [8, 32], strides = [1, 1]} : vector<8x128xf32> to vector<8x32xf32>
    %137 = vector.extract_strided_slice %132 {offsets = [0, 96], sizes = [8, 32], strides = [1, 1]} : vector<8x128xf32> to vector<8x32xf32>
    %138 = arith.mulf %135, %121 : vector<8x32xf32>
    %139 = arith.mulf %134, %136 : vector<8x32xf32>
    %140 = arith.addf %138, %139 : vector<8x32xf32>
    %141 = math.tanh %140 : vector<8x32xf32>
    %142 = arith.mulf %137, %141 : vector<8x32xf32>
    %143 = vector.extract_strided_slice %7 {offsets = [56, 0], sizes = [8, 128], strides = [1, 1]} : vector<64x128xf32> to vector<8x128xf32>
    %144 = arith.truncf %142 : vector<8x32xf32> to vector<8x32xbf16>
    %cst_23 = arith.constant dense<0.000000e+00> : vector<8x128xf32>
    %145 = tpu.matmul %144, %1, %cst_23 {dimension_numbers = #tpu.dot_dimension_numbers<[1], [0], [0], [1], [0, 0, 1, 1], [], []>} : vector<8x32xbf16>, vector<32x128xbf16>, vector<8x128xf32> -> vector<8x128xf32>
    %146 = arith.addf %143, %145 : vector<8x128xf32>
    %147 = arith.negf %146 : vector<8x128xf32>
    %148 = math.exp %147 : vector<8x128xf32>
    %cst_24 = arith.constant 1.000000e+00 : f32
    %149 = vector.broadcast %cst_24 : f32 to vector<8x128xf32>
    %150 = arith.addf %149, %148 : vector<8x128xf32>
    %151 = arith.divf %149, %150 : vector<8x128xf32>
    %152 = math.tanh %146 : vector<8x128xf32>
    %153 = vector.extract_strided_slice %151 {offsets = [0, 0], sizes = [8, 32], strides = [1, 1]} : vector<8x128xf32> to vector<8x32xf32>
    %154 = vector.extract_strided_slice %151 {offsets = [0, 32], sizes = [8, 32], strides = [1, 1]} : vector<8x128xf32> to vector<8x32xf32>
    %155 = vector.extract_strided_slice %152 {offsets = [0, 64], sizes = [8, 32], strides = [1, 1]} : vector<8x128xf32> to vector<8x32xf32>
    %156 = vector.extract_strided_slice %151 {offsets = [0, 96], sizes = [8, 32], strides = [1, 1]} : vector<8x128xf32> to vector<8x32xf32>
    %157 = arith.mulf %154, %140 : vector<8x32xf32>
    %158 = arith.mulf %153, %155 : vector<8x32xf32>
    %159 = arith.addf %157, %158 : vector<8x32xf32>
    %160 = math.tanh %159 : vector<8x32xf32>
    %161 = arith.mulf %156, %160 : vector<8x32xf32>
    %c0_25 = arith.constant 0 : index
    %c0_26 = arith.constant 0 : index
    %162 = vector.load %arg4[%c0_25, %c0_26] : memref<32x128xbf16, #tpu.memory_space<vmem>>, vector<32x128xbf16>
    %c0_27 = arith.constant 0 : index
    %c0_28 = arith.constant 0 : index
    %163 = vector.load %arg5[%c0_27, %c0_28] : memref<32x128xbf16, #tpu.memory_space<vmem>>, vector<32x128xbf16>
    %c0_29 = arith.constant 0 : index
    %c0_30 = arith.constant 0 : index
    %164 = vector.load %arg6[%c0_29, %c0_30] : memref<1x128xf32, #tpu.memory_space<vmem>>, vector<1x128xf32>
    %165 = tpu.concatenate %28, %47, %66, %85, %104, %123, %142, %161 in 0 : vector<8x32xf32>, vector<8x32xf32>, vector<8x32xf32>, vector<8x32xf32>, vector<8x32xf32>, vector<8x32xf32>, vector<8x32xf32>, vector<8x32xf32> -> vector<64x32xf32>
    %166 = arith.truncf %165 : vector<64x32xf32> to vector<64x32xbf16>
    %cst_31 = arith.constant dense<0.000000e+00> : vector<64x128xf32>
    %167 = tpu.matmul %166, %162, %cst_31 {dimension_numbers = #tpu.dot_dimension_numbers<[1], [0], [0], [1], [0, 0, 1, 1], [], []>} : vector<64x32xbf16>, vector<32x128xbf16>, vector<64x128xf32> -> vector<64x128xf32>
    %168 = vector.broadcast %164 : vector<1x128xf32> to vector<64x128xf32>
    %169 = arith.addf %167, %168 : vector<64x128xf32>
    %cst_32 = arith.constant 0.000000e+00 : f32
    %170 = vector.broadcast %cst_32 : f32 to vector<8x32xf32>
    %cst_33 = arith.constant 0.000000e+00 : f32
    %171 = vector.broadcast %cst_33 : f32 to vector<8x32xf32>
    %172 = vector.extract_strided_slice %169 {offsets = [0, 0], sizes = [8, 128], strides = [1, 1]} : vector<64x128xf32> to vector<8x128xf32>
    %173 = arith.truncf %170 : vector<8x32xf32> to vector<8x32xbf16>
    %cst_34 = arith.constant dense<0.000000e+00> : vector<8x128xf32>
    %174 = tpu.matmul %173, %163, %cst_34 {dimension_numbers = #tpu.dot_dimension_numbers<[1], [0], [0], [1], [0, 0, 1, 1], [], []>} : vector<8x32xbf16>, vector<32x128xbf16>, vector<8x128xf32> -> vector<8x128xf32>
    %175 = arith.addf %172, %174 : vector<8x128xf32>
    %176 = arith.negf %175 : vector<8x128xf32>
    %177 = math.exp %176 : vector<8x128xf32>
    %cst_35 = arith.constant 1.000000e+00 : f32
    %178 = vector.broadcast %cst_35 : f32 to vector<8x128xf32>
    %179 = arith.addf %178, %177 : vector<8x128xf32>
    %180 = arith.divf %178, %179 : vector<8x128xf32>
    %181 = math.tanh %175 : vector<8x128xf32>
    %182 = vector.extract_strided_slice %180 {offsets = [0, 0], sizes = [8, 32], strides = [1, 1]} : vector<8x128xf32> to vector<8x32xf32>
    %183 = vector.extract_strided_slice %180 {offsets = [0, 32], sizes = [8, 32], strides = [1, 1]} : vector<8x128xf32> to vector<8x32xf32>
    %184 = vector.extract_strided_slice %181 {offsets = [0, 64], sizes = [8, 32], strides = [1, 1]} : vector<8x128xf32> to vector<8x32xf32>
    %185 = vector.extract_strided_slice %180 {offsets = [0, 96], sizes = [8, 32], strides = [1, 1]} : vector<8x128xf32> to vector<8x32xf32>
    %186 = arith.mulf %183, %171 : vector<8x32xf32>
    %187 = arith.mulf %182, %184 : vector<8x32xf32>
    %188 = arith.addf %186, %187 : vector<8x32xf32>
    %189 = math.tanh %188 : vector<8x32xf32>
    %190 = arith.mulf %185, %189 : vector<8x32xf32>
    %191 = vector.extract_strided_slice %169 {offsets = [8, 0], sizes = [8, 128], strides = [1, 1]} : vector<64x128xf32> to vector<8x128xf32>
    %192 = arith.truncf %190 : vector<8x32xf32> to vector<8x32xbf16>
    %cst_36 = arith.constant dense<0.000000e+00> : vector<8x128xf32>
    %193 = tpu.matmul %192, %163, %cst_36 {dimension_numbers = #tpu.dot_dimension_numbers<[1], [0], [0], [1], [0, 0, 1, 1], [], []>} : vector<8x32xbf16>, vector<32x128xbf16>, vector<8x128xf32> -> vector<8x128xf32>
    %194 = arith.addf %191, %193 : vector<8x128xf32>
    %195 = arith.negf %194 : vector<8x128xf32>
    %196 = math.exp %195 : vector<8x128xf32>
    %cst_37 = arith.constant 1.000000e+00 : f32
    %197 = vector.broadcast %cst_37 : f32 to vector<8x128xf32>
    %198 = arith.addf %197, %196 : vector<8x128xf32>
    %199 = arith.divf %197, %198 : vector<8x128xf32>
    %200 = math.tanh %194 : vector<8x128xf32>
    %201 = vector.extract_strided_slice %199 {offsets = [0, 0], sizes = [8, 32], strides = [1, 1]} : vector<8x128xf32> to vector<8x32xf32>
    %202 = vector.extract_strided_slice %199 {offsets = [0, 32], sizes = [8, 32], strides = [1, 1]} : vector<8x128xf32> to vector<8x32xf32>
    %203 = vector.extract_strided_slice %200 {offsets = [0, 64], sizes = [8, 32], strides = [1, 1]} : vector<8x128xf32> to vector<8x32xf32>
    %204 = vector.extract_strided_slice %199 {offsets = [0, 96], sizes = [8, 32], strides = [1, 1]} : vector<8x128xf32> to vector<8x32xf32>
    %205 = arith.mulf %202, %188 : vector<8x32xf32>
    %206 = arith.mulf %201, %203 : vector<8x32xf32>
    %207 = arith.addf %205, %206 : vector<8x32xf32>
    %208 = math.tanh %207 : vector<8x32xf32>
    %209 = arith.mulf %204, %208 : vector<8x32xf32>
    %210 = vector.extract_strided_slice %169 {offsets = [16, 0], sizes = [8, 128], strides = [1, 1]} : vector<64x128xf32> to vector<8x128xf32>
    %211 = arith.truncf %209 : vector<8x32xf32> to vector<8x32xbf16>
    %cst_38 = arith.constant dense<0.000000e+00> : vector<8x128xf32>
    %212 = tpu.matmul %211, %163, %cst_38 {dimension_numbers = #tpu.dot_dimension_numbers<[1], [0], [0], [1], [0, 0, 1, 1], [], []>} : vector<8x32xbf16>, vector<32x128xbf16>, vector<8x128xf32> -> vector<8x128xf32>
    %213 = arith.addf %210, %212 : vector<8x128xf32>
    %214 = arith.negf %213 : vector<8x128xf32>
    %215 = math.exp %214 : vector<8x128xf32>
    %cst_39 = arith.constant 1.000000e+00 : f32
    %216 = vector.broadcast %cst_39 : f32 to vector<8x128xf32>
    %217 = arith.addf %216, %215 : vector<8x128xf32>
    %218 = arith.divf %216, %217 : vector<8x128xf32>
    %219 = math.tanh %213 : vector<8x128xf32>
    %220 = vector.extract_strided_slice %218 {offsets = [0, 0], sizes = [8, 32], strides = [1, 1]} : vector<8x128xf32> to vector<8x32xf32>
    %221 = vector.extract_strided_slice %218 {offsets = [0, 32], sizes = [8, 32], strides = [1, 1]} : vector<8x128xf32> to vector<8x32xf32>
    %222 = vector.extract_strided_slice %219 {offsets = [0, 64], sizes = [8, 32], strides = [1, 1]} : vector<8x128xf32> to vector<8x32xf32>
    %223 = vector.extract_strided_slice %218 {offsets = [0, 96], sizes = [8, 32], strides = [1, 1]} : vector<8x128xf32> to vector<8x32xf32>
    %224 = arith.mulf %221, %207 : vector<8x32xf32>
    %225 = arith.mulf %220, %222 : vector<8x32xf32>
    %226 = arith.addf %224, %225 : vector<8x32xf32>
    %227 = math.tanh %226 : vector<8x32xf32>
    %228 = arith.mulf %223, %227 : vector<8x32xf32>
    %229 = vector.extract_strided_slice %169 {offsets = [24, 0], sizes = [8, 128], strides = [1, 1]} : vector<64x128xf32> to vector<8x128xf32>
    %230 = arith.truncf %228 : vector<8x32xf32> to vector<8x32xbf16>
    %cst_40 = arith.constant dense<0.000000e+00> : vector<8x128xf32>
    %231 = tpu.matmul %230, %163, %cst_40 {dimension_numbers = #tpu.dot_dimension_numbers<[1], [0], [0], [1], [0, 0, 1, 1], [], []>} : vector<8x32xbf16>, vector<32x128xbf16>, vector<8x128xf32> -> vector<8x128xf32>
    %232 = arith.addf %229, %231 : vector<8x128xf32>
    %233 = arith.negf %232 : vector<8x128xf32>
    %234 = math.exp %233 : vector<8x128xf32>
    %cst_41 = arith.constant 1.000000e+00 : f32
    %235 = vector.broadcast %cst_41 : f32 to vector<8x128xf32>
    %236 = arith.addf %235, %234 : vector<8x128xf32>
    %237 = arith.divf %235, %236 : vector<8x128xf32>
    %238 = math.tanh %232 : vector<8x128xf32>
    %239 = vector.extract_strided_slice %237 {offsets = [0, 0], sizes = [8, 32], strides = [1, 1]} : vector<8x128xf32> to vector<8x32xf32>
    %240 = vector.extract_strided_slice %237 {offsets = [0, 32], sizes = [8, 32], strides = [1, 1]} : vector<8x128xf32> to vector<8x32xf32>
    %241 = vector.extract_strided_slice %238 {offsets = [0, 64], sizes = [8, 32], strides = [1, 1]} : vector<8x128xf32> to vector<8x32xf32>
    %242 = vector.extract_strided_slice %237 {offsets = [0, 96], sizes = [8, 32], strides = [1, 1]} : vector<8x128xf32> to vector<8x32xf32>
    %243 = arith.mulf %240, %226 : vector<8x32xf32>
    %244 = arith.mulf %239, %241 : vector<8x32xf32>
    %245 = arith.addf %243, %244 : vector<8x32xf32>
    %246 = math.tanh %245 : vector<8x32xf32>
    %247 = arith.mulf %242, %246 : vector<8x32xf32>
    %248 = vector.extract_strided_slice %169 {offsets = [32, 0], sizes = [8, 128], strides = [1, 1]} : vector<64x128xf32> to vector<8x128xf32>
    %249 = arith.truncf %247 : vector<8x32xf32> to vector<8x32xbf16>
    %cst_42 = arith.constant dense<0.000000e+00> : vector<8x128xf32>
    %250 = tpu.matmul %249, %163, %cst_42 {dimension_numbers = #tpu.dot_dimension_numbers<[1], [0], [0], [1], [0, 0, 1, 1], [], []>} : vector<8x32xbf16>, vector<32x128xbf16>, vector<8x128xf32> -> vector<8x128xf32>
    %251 = arith.addf %248, %250 : vector<8x128xf32>
    %252 = arith.negf %251 : vector<8x128xf32>
    %253 = math.exp %252 : vector<8x128xf32>
    %cst_43 = arith.constant 1.000000e+00 : f32
    %254 = vector.broadcast %cst_43 : f32 to vector<8x128xf32>
    %255 = arith.addf %254, %253 : vector<8x128xf32>
    %256 = arith.divf %254, %255 : vector<8x128xf32>
    %257 = math.tanh %251 : vector<8x128xf32>
    %258 = vector.extract_strided_slice %256 {offsets = [0, 0], sizes = [8, 32], strides = [1, 1]} : vector<8x128xf32> to vector<8x32xf32>
    %259 = vector.extract_strided_slice %256 {offsets = [0, 32], sizes = [8, 32], strides = [1, 1]} : vector<8x128xf32> to vector<8x32xf32>
    %260 = vector.extract_strided_slice %257 {offsets = [0, 64], sizes = [8, 32], strides = [1, 1]} : vector<8x128xf32> to vector<8x32xf32>
    %261 = vector.extract_strided_slice %256 {offsets = [0, 96], sizes = [8, 32], strides = [1, 1]} : vector<8x128xf32> to vector<8x32xf32>
    %262 = arith.mulf %259, %245 : vector<8x32xf32>
    %263 = arith.mulf %258, %260 : vector<8x32xf32>
    %264 = arith.addf %262, %263 : vector<8x32xf32>
    %265 = math.tanh %264 : vector<8x32xf32>
    %266 = arith.mulf %261, %265 : vector<8x32xf32>
    %267 = vector.extract_strided_slice %169 {offsets = [40, 0], sizes = [8, 128], strides = [1, 1]} : vector<64x128xf32> to vector<8x128xf32>
    %268 = arith.truncf %266 : vector<8x32xf32> to vector<8x32xbf16>
    %cst_44 = arith.constant dense<0.000000e+00> : vector<8x128xf32>
    %269 = tpu.matmul %268, %163, %cst_44 {dimension_numbers = #tpu.dot_dimension_numbers<[1], [0], [0], [1], [0, 0, 1, 1], [], []>} : vector<8x32xbf16>, vector<32x128xbf16>, vector<8x128xf32> -> vector<8x128xf32>
    %270 = arith.addf %267, %269 : vector<8x128xf32>
    %271 = arith.negf %270 : vector<8x128xf32>
    %272 = math.exp %271 : vector<8x128xf32>
    %cst_45 = arith.constant 1.000000e+00 : f32
    %273 = vector.broadcast %cst_45 : f32 to vector<8x128xf32>
    %274 = arith.addf %273, %272 : vector<8x128xf32>
    %275 = arith.divf %273, %274 : vector<8x128xf32>
    %276 = math.tanh %270 : vector<8x128xf32>
    %277 = vector.extract_strided_slice %275 {offsets = [0, 0], sizes = [8, 32], strides = [1, 1]} : vector<8x128xf32> to vector<8x32xf32>
    %278 = vector.extract_strided_slice %275 {offsets = [0, 32], sizes = [8, 32], strides = [1, 1]} : vector<8x128xf32> to vector<8x32xf32>
    %279 = vector.extract_strided_slice %276 {offsets = [0, 64], sizes = [8, 32], strides = [1, 1]} : vector<8x128xf32> to vector<8x32xf32>
    %280 = vector.extract_strided_slice %275 {offsets = [0, 96], sizes = [8, 32], strides = [1, 1]} : vector<8x128xf32> to vector<8x32xf32>
    %281 = arith.mulf %278, %264 : vector<8x32xf32>
    %282 = arith.mulf %277, %279 : vector<8x32xf32>
    %283 = arith.addf %281, %282 : vector<8x32xf32>
    %284 = math.tanh %283 : vector<8x32xf32>
    %285 = arith.mulf %280, %284 : vector<8x32xf32>
    %286 = vector.extract_strided_slice %169 {offsets = [48, 0], sizes = [8, 128], strides = [1, 1]} : vector<64x128xf32> to vector<8x128xf32>
    %287 = arith.truncf %285 : vector<8x32xf32> to vector<8x32xbf16>
    %cst_46 = arith.constant dense<0.000000e+00> : vector<8x128xf32>
    %288 = tpu.matmul %287, %163, %cst_46 {dimension_numbers = #tpu.dot_dimension_numbers<[1], [0], [0], [1], [0, 0, 1, 1], [], []>} : vector<8x32xbf16>, vector<32x128xbf16>, vector<8x128xf32> -> vector<8x128xf32>
    %289 = arith.addf %286, %288 : vector<8x128xf32>
    %290 = arith.negf %289 : vector<8x128xf32>
    %291 = math.exp %290 : vector<8x128xf32>
    %cst_47 = arith.constant 1.000000e+00 : f32
    %292 = vector.broadcast %cst_47 : f32 to vector<8x128xf32>
    %293 = arith.addf %292, %291 : vector<8x128xf32>
    %294 = arith.divf %292, %293 : vector<8x128xf32>
    %295 = math.tanh %289 : vector<8x128xf32>
    %296 = vector.extract_strided_slice %294 {offsets = [0, 0], sizes = [8, 32], strides = [1, 1]} : vector<8x128xf32> to vector<8x32xf32>
    %297 = vector.extract_strided_slice %294 {offsets = [0, 32], sizes = [8, 32], strides = [1, 1]} : vector<8x128xf32> to vector<8x32xf32>
    %298 = vector.extract_strided_slice %295 {offsets = [0, 64], sizes = [8, 32], strides = [1, 1]} : vector<8x128xf32> to vector<8x32xf32>
    %299 = vector.extract_strided_slice %294 {offsets = [0, 96], sizes = [8, 32], strides = [1, 1]} : vector<8x128xf32> to vector<8x32xf32>
    %300 = arith.mulf %297, %283 : vector<8x32xf32>
    %301 = arith.mulf %296, %298 : vector<8x32xf32>
    %302 = arith.addf %300, %301 : vector<8x32xf32>
    %303 = math.tanh %302 : vector<8x32xf32>
    %304 = arith.mulf %299, %303 : vector<8x32xf32>
    %305 = vector.extract_strided_slice %169 {offsets = [56, 0], sizes = [8, 128], strides = [1, 1]} : vector<64x128xf32> to vector<8x128xf32>
    %306 = arith.truncf %304 : vector<8x32xf32> to vector<8x32xbf16>
    %cst_48 = arith.constant dense<0.000000e+00> : vector<8x128xf32>
    %307 = tpu.matmul %306, %163, %cst_48 {dimension_numbers = #tpu.dot_dimension_numbers<[1], [0], [0], [1], [0, 0, 1, 1], [], []>} : vector<8x32xbf16>, vector<32x128xbf16>, vector<8x128xf32> -> vector<8x128xf32>
    %308 = arith.addf %305, %307 : vector<8x128xf32>
    %309 = arith.negf %308 : vector<8x128xf32>
    %310 = math.exp %309 : vector<8x128xf32>
    %cst_49 = arith.constant 1.000000e+00 : f32
    %311 = vector.broadcast %cst_49 : f32 to vector<8x128xf32>
    %312 = arith.addf %311, %310 : vector<8x128xf32>
    %313 = arith.divf %311, %312 : vector<8x128xf32>
    %314 = math.tanh %308 : vector<8x128xf32>
    %315 = vector.extract_strided_slice %313 {offsets = [0, 0], sizes = [8, 32], strides = [1, 1]} : vector<8x128xf32> to vector<8x32xf32>
    %316 = vector.extract_strided_slice %313 {offsets = [0, 32], sizes = [8, 32], strides = [1, 1]} : vector<8x128xf32> to vector<8x32xf32>
    %317 = vector.extract_strided_slice %314 {offsets = [0, 64], sizes = [8, 32], strides = [1, 1]} : vector<8x128xf32> to vector<8x32xf32>
    %318 = vector.extract_strided_slice %313 {offsets = [0, 96], sizes = [8, 32], strides = [1, 1]} : vector<8x128xf32> to vector<8x32xf32>
    %319 = arith.mulf %316, %302 : vector<8x32xf32>
    %320 = arith.mulf %315, %317 : vector<8x32xf32>
    %321 = arith.addf %319, %320 : vector<8x32xf32>
    %322 = math.tanh %321 : vector<8x32xf32>
    %323 = arith.mulf %318, %322 : vector<8x32xf32>
    %c0_50 = arith.constant 0 : index
    %c0_51 = arith.constant 0 : index
    %324 = vector.load %arg7[%c0_50, %c0_51] : memref<1x32xf32, #tpu.memory_space<vmem>>, vector<1x32xf32>
    %325 = vector.broadcast %324 : vector<1x32xf32> to vector<8x32xf32>
    %326 = arith.mulf %323, %325 : vector<8x32xf32>
    %cst_52 = arith.constant dense<0.000000e+00> : vector<8xf32>
    %327 = vector.multi_reduction <add>, %326, %cst_52 [1] : vector<8x32xf32> to vector<8xf32>
    %328 = vector.shape_cast %327 : vector<8xf32> to vector<8x1xf32>
    %c0_53 = arith.constant 0 : index
    %c0_54 = arith.constant 0 : index
    %329 = vector.load %arg8[%c0_53, %c0_54] : memref<1x1xf32, #tpu.memory_space<vmem>>, vector<1x1xf32>
    %330 = vector.broadcast %329 : vector<1x1xf32> to vector<8x1xf32>
    %331 = arith.addf %328, %330 : vector<8x1xf32>
    %c0_55 = arith.constant 0 : index
    %c0_56 = arith.constant 0 : index
    %332 = vector.load %arg9[%c0_55, %c0_56] : memref<8x1xf32, #tpu.memory_space<vmem>>, vector<8x1xf32>
    tpu.vector_store %arg9[%c0_55, %c0_56], %331 {strides = array<i32>} : memref<8x1xf32, #tpu.memory_space<vmem>>, vector<8x1xf32>,
    return
  }
}

</mosaic_0001>

<bundles_post_ra>
// kernel: stock_lstm_forward.1
= control target key start
LH: loop header
LB: loop body
LE: loop exit
PB: predicated region body
PF: predicated region fallthrough
CT: control target
= control target key end

     0   :  { %vm72_vm0 = vcmask 1041408   ;;  %v1856_v1 = vmov 0.0   ;;  %vm1857_vm1 = vmmov 0   ;;  %vm59_vm2 = vcmask 31744   ;;  %s1859_s23 = smov 64   ;;  %s1861_s18 = smov 96   ;;  %s2263_s1 = inlined_call_operand.vmem [shape: bf16[4,128], index: 1, kind: input, shape index: {}]   ;;  %s2264_s2 = inlined_call_operand.vmem [shape: bf16[32,128], index: 2, kind: input, shape index: {}]   ;;  %s2265_s0 = inlined_call_operand.vmem [shape: f32[64,4], index: 0, kind: input, shape index: {}]   ;;  %s2266_s3 = inlined_call_operand.vmem [shape: f32[1,128], index: 3, kind: input, shape index: {}]   ;;  %s2267_s4 = inlined_call_operand.vmem [shape: bf16[32,128], index: 4, kind: input, shape index: {}]   ;;  %s2268_s5 = inlined_call_operand.vmem [shape: bf16[32,128], index: 5, kind: input, shape index: {}]   ;;  %s2269_s6 = inlined_call_operand.vmem [shape: f32[1,128], index: 6, kind: input, shape index: {}]   ;;  %s2270_s7 = inlined_call_operand.vmem [shape: f32[1,32], index: 7, kind: input, shape index: {}]   ;;  %s2271_s8 = inlined_call_operand.<no memory space> [shape: f32[1,1], index: 8, kind: input, shape index: {}]   ;;  %s2272_s9 = inlined_call_operand.vmem [shape: f32[8,1], index: 9, kind: output, shape index: {}]  }
   0x1   :  { %v35_v0 = vld [vmem:[%s2263_s1] sm:$0x3]  ;;  %1575 = vmatprep.subr.bf16.mxu1 %v1856_v1  ;;  %1579 = vmatprep.mubr.msk.bf16.mxu1 %vm1857_vm1, %v1856_v1  ;;  %v1921_v3 = vld [vmem:[%s2264_s2 + $0x8] sm:$0xff]   ;;  %v43_v7 = vld [vmem:[%s2265_s0 + $0x10] sm:$0xff]  ;;  %v1858_v11 = vmov 0   ;;  %vm153_vm3 = vcmask 261120  }
   0x2   :  { %1715 = vmatprep.subr.msk.bf16.mxu0 %vm72_vm0, %v35_v0  ;;  %v74_v2 = vsel %vm72_vm0, %v35_v0, 0  ;;  %v41_v4 = vld [vmem:[%s2265_s0] sm:$0xff]  ;;  %v42_v5 = vld [vmem:[%s2265_s0 + $0x8] sm:$0xff]  ;;  %v44_v8 = vld [vmem:[%s2265_s0 + $0x18] sm:$0xff]  ;;  %1576 = vmatpush3.bf16.msra.mxu1 %v1921_v3  ;;  %vm1452_vm4 = vcmask 7168  }
   0x3   :  { %1566 = vmatpush3.bf16.msra.mxu0 %v74_v2  ;;  %v49_v6 = vpack.c.bf16 %v42_v5, %v41_v4  ;;  %v50_v9 = vpack.c.bf16 %v44_v8, %v43_v7  ;;  %v1939_v10 = vld [vmem:[%s2264_s2] sm:$0xff]   ;;  %1577 = vmatprep.subr.bf16.mxu1 %v1856_v1  ;;  %v46_v55 = vld [vmem:[%s2265_s0 + $0x28] sm:$0xff]  ;;  %v47_v56 = vld [vmem:[%s2265_s0 + $0x30] sm:$0xff] }
   0x4   :  { %1591 = vmatprep.subr.bf16.mxu0 %v1856_v1  ;;  %v1963_v13 = vld [vmem:[%s2266_s3] ss:$0 sm:$0xff]  ;;  %s1860_s3 = smov 32   ;;  %v48_v58 = vld [vmem:[%s2265_s0 + $0x38] sm:$0xff] }
   0x5   :  { %1567 = vmatprep.mubr.msk.bf16.mxu0 %vm59_vm2, %v49_v6  ;;  %v45_v54 = vld [vmem:[%s2265_s0 + $0x20] sm:$0xff]  ;;  %v52_v59 = vpack.c.bf16 %v48_v58, %v47_v56 }
   0x6   :  { %1568 = vmatmul.mubr.msk.bf16.vlgmr.msra.gmra.mxu0 %vm59_vm2, %v50_v9  ;;  %1578 = vmatpush3.bf16.msra.mxu1 %v1939_v10  ;;  %v51_v57 = vpack.c.bf16 %v46_v55, %v45_v54 }
   0x7   :  { %1592 = vmatpush3.bf16.msra.mxu0 %v1921_v3  ;;  %1583 = vmatprep.subr.bf16.mxu1 %v1856_v1 }
   0x8   :  { %1593 = vmatprep.subr.bf16.mxu0 %v1856_v1  ;;  %1571 = vmatprep.mubr.msk.bf16.mxu0 %vm59_vm2, %v51_v57 }
   0x9   :  { %1580 = vmatmul.mubr.bf16.vlgmr.msra.gmra.mxu1 %v1858_v11 }
   0xa   :  { %1584 = vmatpush3.bf16.msra.mxu1 %v1921_v3  ;;  %1587 = vmatprep.mubr.msk.bf16.mxu1 %vm1857_vm1, %v1856_v1 }
   0xb   :  { %1594 = vmatpush3.bf16.msra.mxu0 %v1939_v10  ;;  %1585 = vmatprep.subr.bf16.mxu1 %v1856_v1 }
   0xc   :  { %1607 = vmatprep.subr.bf16.mxu0 %v1856_v1 }
   0xe   :  { %1586 = vmatpush3.bf16.msra.mxu1 %v1939_v10  ;;  %1572 = vmatmul.mubr.msk.bf16.gmra.mxu0 %vm59_vm2, %v52_v59 }
   0xf   :  { %1599 = vmatprep.subr.bf16.mxu1 %v1856_v1  ;;  %1595 = vmatprep.mubr.msk.bf16.mxu0 %vm1857_vm1, %v1856_v1 }
  0xc6   :  { %v1958_v12 = vpop.f32.mrf.mxu0 }
  0xc7   :  { %v119_v7 = vadd.f32 %v1958_v12, %v1963_v13 }
  0xc8   :  { %v110_v14 = vpop.f32.mrf.mxu0 }
  0xc9   :  { %v111_v15 = vadd.f32 %v1963_v13, %v110_v14  ;;  %v191_v16 = vpop.f32.mrf.mxu1 }
  0xca   :  { %v1981_v36 = vpop.f32.mrf.mxu0 }
  0xcb   :  { %v197_v17 = vadd.f32 %v191_v16, %v111_v15  ;;  %v1581_v18 = vpop.f32.mrf.mxu1 }
  0xcc   :  { %v113_v37 = vpop.f32.mrf.mxu0 }
  0xcd   :  { %1728 = vtanh.f32 %v197_v17  ;;  %v194_v19 = vpop.f32.mrf.mxu1  ;;  %v1465_v22 = vmul.f32 -1.442695, %v197_v17  ;;  %v114_v38 = vadd.f32 %v1963_v13, %v113_v37 }
  0xce   :  { %v2015_v2 = vpop.f32.mrf.mxu0 }
  0xcf   :  { %v1582_v20 = vpop.f32.mrf.mxu1  ;;  %1730 = vpow2.f32 %v1465_v22 }
  0xd0   :  { %v2017_v4 = vpop.f32.mrf.mxu0 }
  0xd2   :  { %v2019_v5 = vpop.f32.mrf.mxu0 }
  0xd4   :  { %v2021_v6 = vpop.f32.mrf.mxu0 }
  0xda   :  { %v1729_v21 = vpop.eup %1728 }
  0xdb   :  { %207 = vrot.lane.b32.xlu0 %v1729_v21, %s1859_s23 }
  0xdc   :  { %v1731_v23 = vpop.eup %1730 }
  0xdd   :  { %v201_v24 = vadd.f32 1.0, %v1731_v23 }
  0xdf   :  { %1732 = vrcp.f32 %v201_v24 }
  0xec   :  { %v1733_v25 = vpop.eup %1732 }
  0xed   :  { %v205_v28 = vmul.f32 0.0, %v1733_v25 }
 0x14d   :  { %v208_v26 = vpop.permute.xlu0 %207 }
 0x14e   :  { %v210_v27 = vmul.f32 %v1733_v25, %v208_v26 }
 0x150   :  { %212 = vrot.lane.b32.xlu0 %v210_v27, %s1860_s3 }
 0x1c2   :  { %v213_v29 = vpop.permute.xlu0 %212 }
 0x1c3   :  { %v215_v30 = vadd.f32 %v213_v29, %v205_v28 }
 0x1c5   :  { %1734 = vtanh.f32 %v215_v30 }
 0x1d2   :  { %v1735_v31 = vpop.eup %1734 }
 0x1d3   :  { %218 = vrot.lane.b32.xlu1 %v1735_v31, %s1859_s23  ;;  %v122_v31 = vadd.f32 %v1981_v36, %v1963_v13 }
 0x245   :  { %v219_v32 = vpop.permute.xlu1 %218 }
 0x246   :  { %v1969_v33 = vmul.f32 %v1733_v25, %v219_v32 }
 0x248   :  { %v222_v34 = vpack.c.bf16 %v1969_v33, %v1969_v33 }
 0x24a   :  { %224 = vrot.lane.b32.xlu1 %v222_v34, %s1860_s3 }
 0x2bc   :  { %v225_v35 = vpop.permute.xlu1 %224 }
 0x2bd   :  { %1588 = vmatmul.mubr.msk.bf16.vlgmr.msra.gmra.mxu1 %vm153_vm3, %v225_v35 }
 0x2be   :  { %1600 = vmatpush3.bf16.msra.mxu1 %v1921_v3  ;;  %1603 = vmatprep.mubr.msk.bf16.mxu1 %vm1857_vm1, %v1856_v1 }
 0x2bf   :  { %1601 = vmatprep.subr.bf16.mxu1 %v1856_v1 }
 0x2c2   :  { %1602 = vmatpush3.bf16.msra.mxu1 %v1939_v10 }
 0x2c3   :  { %1615 = vmatprep.subr.bf16.mxu1 %v1856_v1 }
 0x37d   :  { %v263_v39 = vpop.f32.mrf.mxu1 }
 0x37e   :  { %v269_v40 = vadd.f32 %v263_v39, %v114_v38 }
 0x37f   :  { %v1589_v41 = vpop.f32.mrf.mxu1 }
 0x380   :  { %1736 = vtanh.f32 %v269_v40  ;;  %v1467_v45 = vmul.f32 -1.442695, %v269_v40 }
 0x381   :  { %v266_v42 = vpop.f32.mrf.mxu1 }
 0x382   :  { %1738 = vpow2.f32 %v1467_v45 }
 0x383   :  { %v1590_v43 = vpop.f32.mrf.mxu1 }
 0x38d   :  { %v1737_v44 = vpop.eup %1736 }
 0x38e   :  { %279 = vrot.lane.b32.xlu0 %v1737_v44, %s1859_s23 }
 0x38f   :  { %v1739_v46 = vpop.eup %1738 }
 0x390   :  { %v273_v47 = vadd.f32 1.0, %v1739_v46 }
 0x392   :  { %1740 = vrcp.f32 %v273_v47 }
 0x39f   :  { %v1741_v48 = vpop.eup %1740 }
 0x3a0   :  { %v277_v51 = vmul.f32 %v1741_v48, %v215_v30 }
 0x400   :  { %v280_v49 = vpop.permute.xlu0 %279 }
 0x401   :  { %v282_v50 = vmul.f32 %v1741_v48, %v280_v49 }
 0x403   :  { %284 = vrot.lane.b32.xlu1 %v282_v50, %s1860_s3 }
 0x475   :  { %v285_v52 = vpop.permute.xlu1 %284 }
 0x476   :  { %v287_v53 = vadd.f32 %v285_v52, %v277_v51 }
 0x478   :  { %1742 = vtanh.f32 %v287_v53 }
 0x485   :  { %v1743_v60 = vpop.eup %1742 }
 0x486   :  { %290 = vrot.lane.b32.xlu0 %v1743_v60, %s1859_s23 }
 0x4f8   :  { %v291_v61 = vpop.permute.xlu0 %290 }
 0x4f9   :  { %v2003_v62 = vmul.f32 %v1741_v48, %v291_v61 }
 0x4fb   :  { %v294_v63 = vpack.c.bf16 %v2003_v62, %v2003_v62 }
 0x4fd   :  { %296 = vrot.lane.b32.xlu1 %v294_v63, %s1860_s3 }
 0x56f   :  { %v297_v0 = vpop.permute.xlu1 %296 }
 0x570   :  { %1596 = vmatmul.mubr.msk.bf16.vlgmr.msra.gmra.mxu0 %vm153_vm3, %v297_v0 }
 0x571   :  { %1608 = vmatpush3.bf16.msra.mxu0 %v1921_v3  ;;  %1611 = vmatprep.mubr.msk.bf16.mxu0 %vm1857_vm1, %v1856_v1 }
 0x572   :  { %1609 = vmatprep.subr.bf16.mxu0 %v1856_v1 }
 0x575   :  { %1610 = vmatpush3.bf16.msra.mxu0 %v1939_v10 }
 0x576   :  { %1623 = vmatprep.subr.bf16.mxu0 %v1856_v1 }
 0x630   :  { %v335_v8 = vpop.f32.mrf.mxu0 }
 0x631   :  { %v341_v9 = vadd.f32 %v335_v8, %v119_v7 }
 0x632   :  { %v1597_v14 = vpop.f32.mrf.mxu0 }
 0x633   :  { %1744 = vtanh.f32 %v341_v9  ;;  %v1469_v18 = vmul.f32 -1.442695, %v341_v9 }
 0x634   :  { %v338_v15 = vpop.f32.mrf.mxu0 }
 0x635   :  { %1746 = vpow2.f32 %v1469_v18 }
 0x636   :  { %v1598_v16 = vpop.f32.mrf.mxu0 }
 0x640   :  { %v1745_v17 = vpop.eup %1744 }
 0x641   :  { %351 = vrot.lane.b32.xlu0 %v1745_v17, %s1859_s23 }
 0x642   :  { %v1747_v19 = vpop.eup %1746 }
 0x643   :  { %v345_v20 = vadd.f32 1.0, %v1747_v19 }
 0x645   :  { %1748 = vrcp.f32 %v345_v20  ;;  %v130_v20 = vadd.f32 %v1963_v13, %v2021_v6 }
 0x652   :  { %v1749_v21 = vpop.eup %1748 }
 0x653   :  { %v349_v12 = vmul.f32 %v1749_v21, %v287_v53  ;;  %v127_v53 = vadd.f32 %v1963_v13, %v2017_v4 }
 0x6b3   :  { %v352_v22 = vpop.permute.xlu0 %351 }
 0x6b4   :  { %v354_v23 = vmul.f32 %v1749_v21, %v352_v22 }
 0x6b6   :  { %356 = vrot.lane.b32.xlu1 %v354_v23, %s1860_s3 }
 0x728   :  { %v357_v24 = vpop.permute.xlu1 %356 }
 0x729   :  { %v359_v25 = vadd.f32 %v357_v24, %v349_v12 }
 0x72b   :  { %1750 = vtanh.f32 %v359_v25 }
 0x738   :  { %v1751_v26 = vpop.eup %1750 }
 0x739   :  { %362 = vrot.lane.b32.xlu0 %v1751_v26, %s1859_s23 }
 0x7ab   :  { %v363_v27 = vpop.permute.xlu0 %362 }
 0x7ac   :  { %v2028_v28 = vmul.f32 %v1749_v21, %v363_v27 }
 0x7ae   :  { %v366_v29 = vpack.c.bf16 %v2028_v28, %v2028_v28 }
 0x7b0   :  { %368 = vrot.lane.b32.xlu1 %v366_v29, %s1860_s3 }
 0x822   :  { %v369_v30 = vpop.permute.xlu1 %368 }
 0x823   :  { %1604 = vmatmul.mubr.msk.bf16.vlgmr.msra.gmra.mxu1 %vm153_vm3, %v369_v30 }
 0x824   :  { %1616 = vmatpush3.bf16.msra.mxu1 %v1921_v3  ;;  %1619 = vmatprep.mubr.msk.bf16.mxu1 %vm1857_vm1, %v1856_v1 }
 0x825   :  { %1617 = vmatprep.subr.bf16.mxu1 %v1856_v1 }
 0x828   :  { %1618 = vmatpush3.bf16.msra.mxu1 %v1939_v10 }
 0x829   :  { %1631 = vmatprep.subr.bf16.mxu1 %v1856_v1 }
 0x8e3   :  { %v407_v32 = vpop.f32.mrf.mxu1 }
 0x8e4   :  { %v413_v34 = vadd.f32 %v407_v32, %v122_v31 }
 0x8e5   :  { %v1605_v35 = vpop.f32.mrf.mxu1 }
 0x8e6   :  { %1752 = vtanh.f32 %v413_v34  ;;  %v1471_v40 = vmul.f32 -1.442695, %v413_v34 }
 0x8e7   :  { %v410_v37 = vpop.f32.mrf.mxu1 }
 0x8e8   :  { %1754 = vpow2.f32 %v1471_v40  ;;  %v135_v40 = vadd.f32 %v2015_v2, %v1963_v13 }
 0x8e9   :  { %v1606_v38 = vpop.f32.mrf.mxu1 }
 0x8f3   :  { %v1753_v39 = vpop.eup %1752 }
 0x8f4   :  { %423 = vrot.lane.b32.xlu0 %v1753_v39, %s1859_s23 }
 0x8f5   :  { %v1755_v41 = vpop.eup %1754 }
 0x8f6   :  { %v417_v42 = vadd.f32 1.0, %v1755_v41 }
 0x8f8   :  { %1756 = vrcp.f32 %v417_v42 }
 0x905   :  { %v1757_v43 = vpop.eup %1756 }
 0x906   :  { %v421_v36 = vmul.f32 %v1757_v43, %v359_v25 }
 0x966   :  { %v424_v44 = vpop.permute.xlu0 %423 }
 0x967   :  { %v426_v45 = vmul.f32 %v1757_v43, %v424_v44 }
 0x969   :  { %428 = vrot.lane.b32.xlu1 %v426_v45, %s1860_s3 }
 0x9db   :  { %v429_v46 = vpop.permute.xlu1 %428 }
 0x9dc   :  { %v431_v47 = vadd.f32 %v429_v46, %v421_v36 }
 0x9de   :  { %1758 = vtanh.f32 %v431_v47 }
 0x9eb   :  { %v1759_v48 = vpop.eup %1758 }
 0x9ec   :  { %434 = vrot.lane.b32.xlu0 %v1759_v48, %s1859_s23 }
 0xa5e   :  { %v435_v49 = vpop.permute.xlu0 %434 }
 0xa5f   :  { %v2045_v50 = vmul.f32 %v1757_v43, %v435_v49 }
 0xa61   :  { %v438_v51 = vpack.c.bf16 %v2045_v50, %v2045_v50 }
 0xa63   :  { %440 = vrot.lane.b32.xlu1 %v438_v51, %s1860_s3 }
 0xad5   :  { %v441_v52 = vpop.permute.xlu1 %440 }
 0xad6   :  { %1612 = vmatmul.mubr.msk.bf16.vlgmr.msra.gmra.mxu0 %vm153_vm3, %v441_v52 }
 0xad7   :  { %1624 = vmatpush3.bf16.msra.mxu0 %v1921_v3  ;;  %1627 = vmatprep.mubr.msk.bf16.mxu0 %vm1857_vm1, %v1856_v1 }
 0xad8   :  { %1625 = vmatprep.subr.bf16.mxu0 %v1856_v1 }
 0xadb   :  { %1626 = vmatpush3.bf16.msra.mxu0 %v1939_v10 }
 0xb96   :  { %v479_v54 = vpop.f32.mrf.mxu0 }
 0xb97   :  { %v485_v55 = vadd.f32 %v479_v54, %v127_v53 }
 0xb98   :  { %v1613_v56 = vpop.f32.mrf.mxu0 }
 0xb99   :  { %1760 = vtanh.f32 %v485_v55  ;;  %v1473_v60 = vmul.f32 -1.442695, %v485_v55  ;;  %v1724_v55 = vld [vmem:[%s2267_s4 + $0x8] sm:$0xff]   ;;  %v1725_v56 = vld [vmem:[%s2267_s4] sm:$0xff]  }
 0xb9a   :  { %v482_v57 = vpop.f32.mrf.mxu0  ;;  %1639 = vmatprep.subr.bf16.mxu0 %v1724_v55 }
 0xb9b   :  { %1762 = vpow2.f32 %v1473_v60 }
 0xb9c   :  { %v1614_v58 = vpop.f32.mrf.mxu0 }
 0xb9d   :  { %v735_v58 = vpack.c.bf16 %v2003_v62, %v1969_v33  ;;  %v2114_v33 = vld [vmem:[%s2268_s5 + $0x8] sm:$0xff]  }
 0xba6   :  { %v1761_v59 = vpop.eup %1760 }
 0xba7   :  { %495 = vrot.lane.b32.xlu0 %v1761_v59, %s1859_s23 }
 0xba8   :  { %v1763_v61 = vpop.eup %1762 }
 0xba9   :  { %v489_v63 = vadd.f32 1.0, %v1763_v61 }
 0xbab   :  { %1764 = vrcp.f32 %v489_v63 }
 0xbb8   :  { %v1765_v0 = vpop.eup %1764 }
 0xbb9   :  { %v493_v4 = vmul.f32 %v1765_v0, %v431_v47 }
 0xc19   :  { %v496_v7 = vpop.permute.xlu0 %495 }
 0xc1a   :  { %v498_v8 = vmul.f32 %v1765_v0, %v496_v7  ;;  %v2121_v7 = vld [vmem:[%s2268_s5] sm:$0xff]  }
 0xc1c   :  { %500 = vrot.lane.b32.xlu1 %v498_v8, %s1860_s3 }
 0xc8e   :  { %v501_v9 = vpop.permute.xlu1 %500 }
 0xc8f   :  { %v503_v14 = vadd.f32 %v501_v9, %v493_v4 }
 0xc91   :  { %1766 = vtanh.f32 %v503_v14 }
 0xc9e   :  { %v1767_v15 = vpop.eup %1766 }
 0xc9f   :  { %506 = vrot.lane.b32.xlu0 %v1767_v15, %s1859_s23  ;;  %v2147_v15 = vld [vmem:[%s2269_s6] ss:$0 sm:$0xff] }
 0xd11   :  { %v507_v16 = vpop.permute.xlu0 %506 }
 0xd12   :  { %v2061_v17 = vmul.f32 %v1765_v0, %v507_v16  ;;  %v736_v0 = vpack.c.bf16 %v2045_v50, %v2028_v28  ;;  %v138_v50 = vadd.f32 %v2019_v5, %v1963_v13 }
 0xd14   :  { %v510_v18 = vpack.c.bf16 %v2061_v17, %v2061_v17 }
 0xd16   :  { %512 = vrot.lane.b32.xlu1 %v510_v18, %s1860_s3 }
 0xd88   :  { %v513_v19 = vpop.permute.xlu1 %512 }
 0xd89   :  { %1620 = vmatmul.mubr.msk.bf16.vlgmr.msra.gmra.mxu1 %vm153_vm3, %v513_v19 }
 0xd8a   :  { %1632 = vmatpush3.bf16.msra.mxu1 %v1921_v3  ;;  %1635 = vmatprep.mubr.msk.bf16.mxu1 %vm1857_vm1, %v1856_v1 }
 0xd8b   :  { %1633 = vmatprep.subr.bf16.mxu1 %v1856_v1 }
 0xd8e   :  { %1634 = vmatpush3.bf16.msra.mxu1 %v1939_v10 }
 0xd8f   :  { %1651 = vmatprep.subr.bf16.mxu1 %v1856_v1 }
 0xe49   :  { %v551_v21 = vpop.f32.mrf.mxu1 }
 0xe4a   :  { %v557_v22 = vadd.f32 %v551_v21, %v130_v20 }
 0xe4b   :  { %v1621_v23 = vpop.f32.mrf.mxu1 }
 0xe4c   :  { %1768 = vtanh.f32 %v557_v22  ;;  %v1475_v3 = vmul.f32 -1.442695, %v557_v22 }
 0xe4d   :  { %v554_v12 = vpop.f32.mrf.mxu1 }
 0xe4e   :  { %1770 = vpow2.f32 %v1475_v3 }
 0xe4f   :  { %v1622_v24 = vpop.f32.mrf.mxu1 }
 0xe59   :  { %v1769_v25 = vpop.eup %1768 }
 0xe5a   :  { %567 = vrot.lane.b32.xlu0 %v1769_v25, %s1859_s23 }
 0xe5b   :  { %v1771_v26 = vpop.eup %1770 }
 0xe5c   :  { %v561_v27 = vadd.f32 1.0, %v1771_v26 }
 0xe5e   :  { %1772 = vrcp.f32 %v561_v27 }
 0xe6b   :  { %v1773_v10 = vpop.eup %1772 }
 0xe6c   :  { %v565_v6 = vmul.f32 %v1773_v10, %v503_v14 }
 0xecc   :  { %v568_v29 = vpop.permute.xlu0 %567 }
 0xecd   :  { %v570_v30 = vmul.f32 %v1773_v10, %v568_v29 }
 0xecf   :  { %572 = vrot.lane.b32.xlu1 %v570_v30, %s1860_s3 }
 0xf41   :  { %v573_v31 = vpop.permute.xlu1 %572 }
 0xf42   :  { %v575_v32 = vadd.f32 %v573_v31, %v565_v6 }
 0xf44   :  { %1774 = vtanh.f32 %v575_v32 }
 0xf51   :  { %v1775_v34 = vpop.eup %1774 }
 0xf52   :  { %578 = vrot.lane.b32.xlu0 %v1775_v34, %s1859_s23 }
 0xfc4   :  { %v579_v35 = vpop.permute.xlu0 %578 }
 0xfc5   :  { %v2078_v37 = vmul.f32 %v1773_v10, %v579_v35 }
 0xfc7   :  { %v582_v38 = vpack.c.bf16 %v2078_v37, %v2078_v37 }
 0xfc9   :  { %584 = vrot.lane.b32.xlu1 %v582_v38, %s1860_s3 }
0x103b   :  { %v585_v39 = vpop.permute.xlu1 %584 }
0x103c   :  { %1628 = vmatmul.mubr.msk.bf16.vlgmr.msra.gmra.mxu0 %vm153_vm3, %v585_v39 }
0x103d   :  { %1640 = vmatpush3.bf16.msra.mxu0 %v1724_v55 }
0x103e   :  { %1641 = vmatprep.subr.bf16.mxu0 %v1725_v56 }
0x1041   :  { %1642 = vmatpush3.bf16.msra.mxu0 %v1725_v56 }
0x1042   :  { %1667 = vmatprep.subr.bf16.mxu0 %v1856_v1 }
0x10fc   :  { %v623_v41 = vpop.f32.mrf.mxu0 }
0x10fd   :  { %v629_v42 = vadd.f32 %v623_v41, %v135_v40 }
0x10fe   :  { %v1629_v43 = vpop.f32.mrf.mxu0 }
0x10ff   :  { %1776 = vtanh.f32 %v629_v42  ;;  %v1477_v46 = vmul.f32 -1.442695, %v629_v42 }
0x1100   :  { %v626_v44 = vpop.f32.mrf.mxu0 }
0x1101   :  { %1778 = vpow2.f32 %v1477_v46 }
0x1102   :  { %v1630_v45 = vpop.f32.mrf.mxu0 }
0x110c   :  { %v1777_v36 = vpop.eup %1776 }
0x110d   :  { %639 = vrot.lane.b32.xlu0 %v1777_v36, %s1859_s23 }
0x110e   :  { %v1779_v47 = vpop.eup %1778 }
0x110f   :  { %v633_v48 = vadd.f32 1.0, %v1779_v47 }
0x1111   :  { %1780 = vrcp.f32 %v633_v48  ;;  %v737_v48 = vpack.c.bf16 %v2078_v37, %v2061_v17 }
0x111e   :  { %v1781_v49 = vpop.eup %1780 }
0x111f   :  { %v637_v2 = vmul.f32 %v1781_v49, %v575_v32 }
0x117f   :  { %v640_v51 = vpop.permute.xlu0 %639 }
0x1180   :  { %v642_v52 = vmul.f32 %v1781_v49, %v640_v51 }
0x1182   :  { %644 = vrot.lane.b32.xlu1 %v642_v52, %s1860_s3 }
0x11f4   :  { %v645_v53 = vpop.permute.xlu1 %644 }
0x11f5   :  { %v2088_v54 = vadd.f32 %v645_v53, %v637_v2 }
0x11f7   :  { %1782 = vtanh.f32 %v2088_v54 }
0x1204   :  { %v1783_v57 = vpop.eup %1782 }
0x1205   :  { %650 = vrot.lane.b32.xlu0 %v1783_v57, %s1859_s23 }
0x1209   :  { %749 = vrot.lane.b32.xlu0 %v735_v58, %s1860_s3 }
0x1277   :  { %v651_v59 = vpop.permute.xlu0 %650 }
0x1278   :  { %v2102_v60 = vmul.f32 %v1781_v49, %v651_v59 }
0x127a   :  { %v654_v61 = vpack.c.bf16 %v2102_v60, %v2102_v60 }
0x127b   :  { %v750_v63 = vpop.permute.xlu0 %749 }
0x127c   :  { %656 = vrot.lane.b32.xlu1 %v654_v61, %s1860_s3  ;;  %1643 = vmatprep.mubr.msk.bf16.mxu0 %vm153_vm3, %v750_v63 }
0x1280   :  { %751 = vrot.lane.b32.xlu1 %v736_v0, %s1860_s3 }
0x12ee   :  { %v657_v62 = vpop.permute.xlu1 %656 }
0x12ef   :  { %1636 = vmatmul.mubr.msk.bf16.vlgmr.msra.gmra.mxu1 %vm153_vm3, %v657_v62 }
0x12f0   :  { %1652 = vmatpush3.bf16.msra.mxu1 %v2114_v33  ;;  %1655 = vmatprep.mubr.msk.bf16.mxu1 %vm1857_vm1, %v1856_v1 }
0x12f1   :  { %1653 = vmatprep.subr.bf16.mxu1 %v1856_v1 }
0x12f2   :  { %v752_v28 = vpop.permute.xlu1 %751 }
0x12f3   :  { %1644 = vmatmul.mubr.msk.bf16.vlgmr.msra.gmra.mxu0 %vm153_vm3, %v752_v28 }
0x12f4   :  { %1654 = vmatpush3.bf16.msra.mxu1 %v2121_v7  ;;  %1668 = vmatpush3.bf16.msra.mxu0 %v2114_v33 }
0x12f5   :  { %1659 = vmatprep.subr.bf16.mxu1 %v1856_v1  ;;  %1669 = vmatprep.subr.bf16.mxu0 %v1856_v1 }
0x12f7   :  { %1656 = vmatmul.mubr.bf16.vlgmr.msra.gmra.mxu1 %v1858_v11 }
0x12f8   :  { %1660 = vmatpush3.bf16.msra.mxu1 %v2114_v33  ;;  %1663 = vmatprep.mubr.msk.bf16.mxu1 %vm1857_vm1, %v1856_v1 }
0x12f9   :  { %1661 = vmatprep.subr.bf16.mxu1 %v1856_v1  ;;  %1670 = vmatpush3.bf16.msra.mxu0 %v2121_v7 }
0x12fa   :  { %1683 = vmatprep.subr.bf16.mxu0 %v1856_v1 }
0x12fc   :  { %1662 = vmatpush3.bf16.msra.mxu1 %v2121_v7 }
0x12fd   :  { %1675 = vmatprep.subr.bf16.mxu1 %v1856_v1 }
0x13af   :  { %v695_v8 = vpop.f32.mrf.mxu1 }
0x13b0   :  { %v701_v11 = vadd.f32 %v695_v8, %v138_v50 }
0x13b1   :  { %v1637_v4 = vpop.f32.mrf.mxu1 }
0x13b2   :  { %v1479_v32 = vmul.f32 -1.442695, %v701_v11 }
0x13b3   :  { %v698_v9 = vpop.f32.mrf.mxu1  ;;  %v2142_v14 = vpop.f32.mrf.mxu0 }
0x13b5   :  { %v1638_v16 = vpop.f32.mrf.mxu1  ;;  %v815_v18 = vpop.f32.mrf.mxu0 }
0x13b6   :  { %v816_v19 = vadd.f32 %v2147_v15, %v815_v18 }
0x13b7   :  { %v892_v20 = vpop.f32.mrf.mxu1  ;;  %v2169_v52 = vpop.f32.mrf.mxu0 }
0x13b8   :  { %v898_v21 = vadd.f32 %v892_v20, %v816_v19 }
0x13b9   :  { %v1657_v22 = vpop.f32.mrf.mxu1  ;;  %v818_v2 = vpop.f32.mrf.mxu0 }
0x13ba   :  { %1784 = vtanh.f32 %v898_v21  ;;  %v1489_v12 = vmul.f32 -1.442695, %v898_v21  ;;  %v819_v53 = vadd.f32 %v2147_v15, %v818_v2 }
0x13bb   :  { %v895_v13 = vpop.f32.mrf.mxu1 }
0x13bc   :  { %1786 = vpow2.f32 %v1489_v12 }
0x13bd   :  { %v1658_v5 = vpop.f32.mrf.mxu1 }
0x13c7   :  { %v1785_v23 = vpop.eup %1784 }
0x13c8   :  { %908 = vrot.lane.b32.xlu0 %v1785_v23, %s1859_s23  ;;  %v824_v23 = vadd.f32 %v2142_v14, %v2147_v15 }
0x13c9   :  { %v1787_v24 = vpop.eup %1786 }
0x13ca   :  { %v902_v25 = vadd.f32 1.0, %v1787_v24 }
0x13cc   :  { %1788 = vrcp.f32 %v902_v25 }
0x13d9   :  { %v1789_v3 = vpop.eup %1788 }
0x13da   :  { %v906_v10 = vmul.f32 0.0, %v1789_v3 }
0x143a   :  { %v909_v26 = vpop.permute.xlu0 %908 }
0x143b   :  { %v911_v27 = vmul.f32 %v1789_v3, %v909_v26 }
0x143d   :  { %913 = vrot.lane.b32.xlu1 %v911_v27, %s1860_s3 }
0x14af   :  { %v914_v29 = vpop.permute.xlu1 %913 }
0x14b0   :  { %v916_v30 = vadd.f32 %v914_v29, %v906_v10 }
0x14b2   :  { %1790 = vtanh.f32 %v916_v30 }
0x14b3   :  { %1792 = vtanh.f32 %v701_v11 }
0x14b4   :  { %1794 = vpow2.f32 %v1479_v32 }
0x14bf   :  { %v1791_v6 = vpop.eup %1790 }
0x14c0   :  { %919 = vrot.lane.b32.xlu0 %v1791_v6, %s1859_s23  ;;  %v1793_v31 = vpop.eup %1792 }
0x14c1   :  { %v1795_v34 = vpop.eup %1794 }
0x14c2   :  { %v705_v35 = vadd.f32 1.0, %v1795_v34 }
0x14c4   :  { %711 = vrot.lane.b32.xlu0 %v1793_v31, %s1859_s23  ;;  %1796 = vrcp.f32 %v705_v35 }
0x14d1   :  { %v1797_v41 = vpop.eup %1796 }
0x14d2   :  { %v709_v45 = vmul.f32 %v1797_v41, %v2088_v54 }
0x1532   :  { %v920_v38 = vpop.permute.xlu0 %919 }
0x1533   :  { %v922_v39 = vmul.f32 %v1789_v3, %v920_v38 }
0x1535   :  { %v923_v40 = vpack.c.bf16 %v922_v39, %v922_v39 }
0x1536   :  { %v712_v42 = vpop.permute.xlu0 %711 }
0x1537   :  { %v714_v43 = vmul.f32 %v1797_v41, %v712_v42  ;;  %925 = vrot.lane.b32.xlu1 %v923_v40, %s1860_s3 }
0x1539   :  { %716 = vrot.lane.b32.xlu0 %v714_v43, %s1860_s3  ;;  %v827_v43 = vadd.f32 %v2169_v52, %v2147_v15 }
0x15a9   :  { %v926_v44 = vpop.permute.xlu1 %925 }
0x15aa   :  { %1664 = vmatmul.mubr.msk.bf16.vlgmr.msra.gmra.mxu1 %vm153_vm3, %v926_v44 }
0x15ab   :  { %v717_v36 = vpop.permute.xlu0 %716  ;;  %1676 = vmatpush3.bf16.msra.mxu1 %v2114_v33  ;;  %1679 = vmatprep.mubr.msk.bf16.mxu1 %vm1857_vm1, %v1856_v1 }
0x15ac   :  { %v719_v46 = vadd.f32 %v717_v36, %v709_v45  ;;  %1677 = vmatprep.subr.bf16.mxu1 %v1856_v1 }
0x15ae   :  { %1798 = vtanh.f32 %v719_v46 }
0x15af   :  { %1678 = vmatpush3.bf16.msra.mxu1 %v2121_v7 }
0x15b0   :  { %1691 = vmatprep.subr.bf16.mxu1 %v1856_v1 }
0x15bb   :  { %v1799_v47 = vpop.eup %1798 }
0x15bc   :  { %722 = vrot.lane.b32.xlu0 %v1799_v47, %s1859_s23 }
0x15c0   :  { %753 = vrot.lane.b32.xlu0 %v737_v48, %s1860_s3 }
0x162e   :  { %v723_v49 = vpop.permute.xlu0 %722 }
0x162f   :  { %v725_v11 = vmul.f32 %v1797_v41, %v723_v49 }
0x1631   :  { %v738_v9 = vpack.c.bf16 %v725_v11, %v2102_v60 }
0x1632   :  { %v754_v51 = vpop.permute.xlu0 %753 }
0x1633   :  { %1647 = vmatprep.mubr.msk.bf16.mxu0 %vm153_vm3, %v754_v51 }
0x166a   :  { %v964_v54 = vpop.f32.mrf.mxu1 }
0x166b   :  { %v970_v55 = vadd.f32 %v964_v54, %v819_v53 }
0x166c   :  { %v1665_v56 = vpop.f32.mrf.mxu1 }
0x166d   :  { %1800 = vtanh.f32 %v970_v55  ;;  %v1491_v17 = vmul.f32 -1.442695, %v970_v55 }
0x166e   :  { %v967_v57 = vpop.f32.mrf.mxu1 }
0x166f   :  { %1802 = vpow2.f32 %v1491_v17 }
0x1670   :  { %v1666_v58 = vpop.f32.mrf.mxu1 }
0x167a   :  { %v1801_v59 = vpop.eup %1800 }
0x167b   :  { %980 = vrot.lane.b32.xlu1 %v1801_v59, %s1859_s23 }
0x167c   :  { %v1803_v37 = vpop.eup %1802 }
0x167d   :  { %v974_v61 = vadd.f32 1.0, %v1803_v37 }
0x167f   :  { %1804 = vrcp.f32 %v974_v61 }
0x168c   :  { %v1805_v63 = vpop.eup %1804 }
0x168d   :  { %v978_v28 = vmul.f32 %v1805_v63, %v916_v30 }
0x16ed   :  { %v981_v0 = vpop.permute.xlu1 %980 }
0x16ee   :  { %v983_v62 = vmul.f32 %v1805_v63, %v981_v0 }
0x16f0   :  { %985 = vrot.lane.b32.xlu1 %v983_v62, %s1860_s3 }
0x1762   :  { %v986_v50 = vpop.permute.xlu1 %985 }
0x1763   :  { %v988_v8 = vadd.f32 %v986_v50, %v978_v28 }
0x1765   :  { %1806 = vtanh.f32 %v988_v8 }
0x1772   :  { %v1807_v4 = vpop.eup %1806 }
0x1773   :  { %991 = vrot.lane.b32.xlu1 %v1807_v4, %s1859_s23 }
0x1777   :  { %755 = vrot.lane.b32.xlu1 %v738_v9, %s1860_s3 }
0x17e5   :  { %v992_v16 = vpop.permute.xlu1 %991 }
0x17e6   :  { %v994_v18 = vmul.f32 %v1805_v63, %v992_v16 }
0x17e8   :  { %v995_v19 = vpack.c.bf16 %v994_v18, %v994_v18 }
0x17e9   :  { %v756_v20 = vpop.permute.xlu1 %755 }
0x17ea   :  { %997 = vrot.lane.b32.xlu0 %v995_v19, %s1860_s3  ;;  %1648 = vmatmul.mubr.msk.bf16.gmra.mxu0 %vm153_vm3, %v756_v20 }
0x17eb   :  { %1671 = vmatprep.mubr.msk.bf16.mxu0 %vm1857_vm1, %v1856_v1 }
0x185c   :  { %v998_v21 = vpop.permute.xlu0 %997 }
0x185d   :  { %1672 = vmatmul.mubr.msk.bf16.vlgmr.msra.gmra.mxu0 %vm153_vm3, %v998_v21 }
0x185e   :  { %1684 = vmatpush3.bf16.msra.mxu0 %v2114_v33  ;;  %1687 = vmatprep.mubr.msk.bf16.mxu0 %vm1857_vm1, %v1856_v1 }
0x185f   :  { %1685 = vmatprep.subr.bf16.mxu0 %v1856_v1 }
0x1862   :  { %1686 = vmatpush3.bf16.msra.mxu0 %v2121_v7 }
0x1863   :  { %1699 = vmatprep.subr.bf16.mxu0 %v1856_v1 }
0x18aa   :  { %v2188_v60 = vpop.f32.mrf.mxu0 }
0x18ac   :  { %v2190_v22 = vpop.f32.mrf.mxu0 }
0x18ad   :  { %v832_v63 = vadd.f32 %v2147_v15, %v2190_v22 }
0x18ae   :  { %v2192_v13 = vpop.f32.mrf.mxu0 }
0x18b0   :  { %v2194_v5 = vpop.f32.mrf.mxu0 }
0x191d   :  { %v1036_v12 = vpop.f32.mrf.mxu0 }
0x191e   :  { %v1042_v24 = vadd.f32 %v1036_v12, %v824_v23 }
0x191f   :  { %v1673_v25 = vpop.f32.mrf.mxu0 }
0x1920   :  { %1808 = vtanh.f32 %v1042_v24  ;;  %v1493_v10 = vmul.f32 -1.442695, %v1042_v24 }
0x1921   :  { %v1039_v3 = vpop.f32.mrf.mxu0 }
0x1922   :  { %1810 = vpow2.f32 %v1493_v10 }
0x1923   :  { %v1674_v26 = vpop.f32.mrf.mxu0 }
0x192d   :  { %v1809_v27 = vpop.eup %1808 }
0x192e   :  { %1052 = vrot.lane.b32.xlu1 %v1809_v27, %s1859_s23  ;;  %v835_v27 = vadd.f32 %v2147_v15, %v2194_v5 }
0x192f   :  { %v1811_v29 = vpop.eup %1810 }
0x1930   :  { %v1046_v30 = vadd.f32 1.0, %v1811_v29 }
0x1932   :  { %1812 = vrcp.f32 %v1046_v30 }
0x193f   :  { %v1813_v6 = vpop.eup %1812 }
0x1940   :  { %v1050_v14 = vmul.f32 %v1813_v6, %v988_v8 }
0x19a0   :  { %v1053_v31 = vpop.permute.xlu1 %1052 }
0x19a1   :  { %v1055_v32 = vmul.f32 %v1813_v6, %v1053_v31 }
0x19a3   :  { %1057 = vrot.lane.b32.xlu0 %v1055_v32, %s1860_s3 }
0x1a15   :  { %v1058_v34 = vpop.permute.xlu0 %1057 }
0x1a16   :  { %v1060_v35 = vadd.f32 %v1058_v34, %v1050_v14 }
0x1a18   :  { %1814 = vtanh.f32 %v1060_v35 }
0x1a25   :  { %v1815_v38 = vpop.eup %1814 }
0x1a26   :  { %1063 = vrot.lane.b32.xlu1 %v1815_v38, %s1859_s23 }
0x1a98   :  { %v1064_v39 = vpop.permute.xlu1 %1063 }
0x1a99   :  { %v1066_v40 = vmul.f32 %v1813_v6, %v1064_v39 }
0x1a9b   :  { %v1067_v41 = vpack.c.bf16 %v1066_v40, %v1066_v40 }
0x1a9d   :  { %1069 = vrot.lane.b32.xlu0 %v1067_v41, %s1860_s3 }
0x1b0f   :  { %v1070_v42 = vpop.permute.xlu0 %1069 }
0x1b10   :  { %1680 = vmatmul.mubr.msk.bf16.vlgmr.msra.gmra.mxu1 %vm153_vm3, %v1070_v42 }
0x1b11   :  { %1692 = vmatpush3.bf16.msra.mxu1 %v2114_v33  ;;  %1695 = vmatprep.mubr.msk.bf16.mxu1 %vm1857_vm1, %v1856_v1 }
0x1b12   :  { %1693 = vmatprep.subr.bf16.mxu1 %v1856_v1 }
0x1b15   :  { %1694 = vmatpush3.bf16.msra.mxu1 %v2121_v7 }
0x1b16   :  { %1707 = vmatprep.subr.bf16.mxu1 %v1856_v1 }
0x1bd0   :  { %v1108_v44 = vpop.f32.mrf.mxu1 }
0x1bd1   :  { %v1114_v45 = vadd.f32 %v1108_v44, %v827_v43 }
0x1bd2   :  { %v1681_v36 = vpop.f32.mrf.mxu1 }
0x1bd3   :  { %1816 = vtanh.f32 %v1114_v45  ;;  %v1495_v49 = vmul.f32 -1.442695, %v1114_v45  ;;  %v840_v45 = vadd.f32 %v2188_v60, %v2147_v15 }
0x1bd4   :  { %v1111_v46 = vpop.f32.mrf.mxu1 }
0x1bd5   :  { %1818 = vpow2.f32 %v1495_v49 }
0x1bd6   :  { %v1682_v47 = vpop.f32.mrf.mxu1 }
0x1be0   :  { %v1817_v48 = vpop.eup %1816 }
0x1be1   :  { %1124 = vrot.lane.b32.xlu1 %v1817_v48, %s1859_s23 }
0x1be2   :  { %v1819_v51 = vpop.eup %1818 }
0x1be3   :  { %v1118_v2 = vadd.f32 1.0, %v1819_v51 }
0x1be5   :  { %1820 = vrcp.f32 %v1118_v2 }
0x1bf2   :  { %v1821_v53 = vpop.eup %1820 }
0x1bf3   :  { %v1122_v52 = vmul.f32 %v1821_v53, %v1060_v35 }
0x1c53   :  { %v1125_v54 = vpop.permute.xlu1 %1124 }
0x1c54   :  { %v1127_v55 = vmul.f32 %v1821_v53, %v1125_v54 }
0x1c56   :  { %1129 = vrot.lane.b32.xlu0 %v1127_v55, %s1860_s3 }
0x1cc8   :  { %v1130_v56 = vpop.permute.xlu0 %1129 }
0x1cc9   :  { %v1132_v57 = vadd.f32 %v1130_v56, %v1122_v52 }
0x1ccb   :  { %1822 = vtanh.f32 %v1132_v57 }
0x1cd8   :  { %v1823_v58 = vpop.eup %1822 }
0x1cd9   :  { %1135 = vrot.lane.b32.xlu1 %v1823_v58, %s1859_s23 }
0x1d4b   :  { %v1136_v59 = vpop.permute.xlu1 %1135 }
0x1d4c   :  { %v1138_v17 = vmul.f32 %v1821_v53, %v1136_v59 }
0x1d4e   :  { %v1139_v37 = vpack.c.bf16 %v1138_v17, %v1138_v17 }
0x1d50   :  { %1141 = vrot.lane.b32.xlu0 %v1139_v37, %s1860_s3 }
0x1dc2   :  { %v1142_v61 = vpop.permute.xlu0 %1141 }
0x1dc3   :  { %1688 = vmatmul.mubr.msk.bf16.vlgmr.msra.gmra.mxu0 %vm153_vm3, %v1142_v61 }
0x1dc4   :  { %1700 = vmatpush3.bf16.msra.mxu0 %v2114_v33  ;;  %1703 = vmatprep.mubr.msk.bf16.mxu0 %vm1857_vm1, %v1856_v1 }
0x1dc5   :  { %1701 = vmatprep.subr.bf16.mxu0 %v1856_v1 }
0x1dc8   :  { %1702 = vmatpush3.bf16.msra.mxu0 %v2121_v7 }
0x1e83   :  { %v1180_v0 = vpop.f32.mrf.mxu0 }
0x1e84   :  { %v1186_v62 = vadd.f32 %v1180_v0, %v832_v63  ;;  %v843_v0 = vadd.f32 %v2192_v13, %v2147_v15  ;;  %v1504_v15 = vld [vmem:[%s2270_s7] ss:$0 sm:$0xff] }
0x1e85   :  { %v1689_v28 = vpop.f32.mrf.mxu0 }
0x1e86   :  { %1824 = vtanh.f32 %v1186_v62  ;;  %v1497_v4 = vmul.f32 -1.442695, %v1186_v62 }
0x1e87   :  { %v1183_v50 = vpop.f32.mrf.mxu0 }
0x1e88   :  { %1826 = vpow2.f32 %v1497_v4 }
0x1e89   :  { %v1690_v8 = vpop.f32.mrf.mxu0 }
0x1e93   :  { %v1825_v11 = vpop.eup %1824 }
0x1e94   :  { %1196 = vrot.lane.b32.xlu1 %v1825_v11, %s1859_s23 }
0x1e95   :  { %v1827_v9 = vpop.eup %1826 }
0x1e96   :  { %v1190_v16 = vadd.f32 1.0, %v1827_v9 }
0x1e98   :  { %1828 = vrcp.f32 %v1190_v16 }
0x1ea5   :  { %v1829_v18 = vpop.eup %1828 }
0x1ea6   :  { %v1194_v21 = vmul.f32 %v1829_v18, %v1132_v57 }
0x1f06   :  { %v1197_v19 = vpop.permute.xlu1 %1196 }
0x1f07   :  { %v1199_v20 = vmul.f32 %v1829_v18, %v1197_v19 }
0x1f09   :  { %1201 = vrot.lane.b32.xlu0 %v1199_v20, %s1860_s3 }
0x1f7b   :  { %v1202_v22 = vpop.permute.xlu0 %1201 }
0x1f7c   :  { %v1204_v23 = vadd.f32 %v1202_v22, %v1194_v21 }
0x1f7e   :  { %1830 = vtanh.f32 %v1204_v23 }
0x1f8b   :  { %v1831_v12 = vpop.eup %1830 }
0x1f8c   :  { %1207 = vrot.lane.b32.xlu1 %v1831_v12, %s1859_s23 }
0x1ffe   :  { %v1208_v24 = vpop.permute.xlu1 %1207 }
0x1fff   :  { %v1210_v25 = vmul.f32 %v1829_v18, %v1208_v24  ;;  %v14_v24 = vstv %s2271_s8 }
0x2000   :  { %15 = vst [vmem:[#allocation2] sm:$0x1] %v14_v24 }
0x2001   :  { %v1211_v3 = vpack.c.bf16 %v1210_v25, %v1210_v25 }
0x2003   :  { %1213 = vrot.lane.b32.xlu0 %v1211_v3, %s1860_s3 }
0x2075   :  { %v1214_v26 = vpop.permute.xlu0 %1213 }
0x2076   :  { %1696 = vmatmul.mubr.msk.bf16.vlgmr.msra.gmra.mxu1 %vm153_vm3, %v1214_v26 }
0x2077   :  { %1708 = vmatpush3.bf16.msra.mxu1 %v2114_v33  ;;  %1711 = vmatprep.mubr.msk.bf16.mxu1 %vm1857_vm1, %v1856_v1 }
0x2078   :  { %1709 = vmatprep.subr.bf16.mxu1 %v1856_v1 }
0x207b   :  { %1710 = vmatpush3.bf16.msra.mxu1 %v2121_v7 }
0x2136   :  { %v1252_v10 = vpop.f32.mrf.mxu1 }
0x2137   :  { %v1258_v29 = vadd.f32 %v1252_v10, %v835_v27 }
0x2138   :  { %v1697_v30 = vpop.f32.mrf.mxu1 }
0x2139   :  { %1832 = vtanh.f32 %v1258_v29  ;;  %v1499_v33 = vmul.f32 -1.442695, %v1258_v29  ;;  %v1505_v30 = vld [vmem:[#allocation2] ss:$0 sm:$0xff] }
0x213a   :  { %v1255_v6 = vpop.f32.mrf.mxu1 }
0x213b   :  { %1834 = vpow2.f32 %v1499_v33 }
0x213c   :  { %v1698_v31 = vpop.f32.mrf.mxu1 }
0x2146   :  { %v1833_v32 = vpop.eup %1832 }
0x2147   :  { %1268 = vrot.lane.b32.xlu1 %v1833_v32, %s1859_s23 }
0x2148   :  { %v1835_v14 = vpop.eup %1834 }
0x2149   :  { %v1262_v34 = vadd.f32 1.0, %v1835_v14 }
0x214b   :  { %1836 = vrcp.f32 %v1262_v34 }
0x2158   :  { %v1837_v1 = vpop.eup %1836 }
0x2159   :  { %v1266_v5 = vmul.f32 %v1837_v1, %v1204_v23 }
0x21b9   :  { %v1269_v35 = vpop.permute.xlu1 %1268 }
0x21ba   :  { %v1271_v7 = vmul.f32 %v1837_v1, %v1269_v35 }
0x21bc   :  { %1273 = vrot.lane.b32.xlu0 %v1271_v7, %s1860_s3 }
0x222e   :  { %v1274_v38 = vpop.permute.xlu0 %1273 }
0x222f   :  { %v1276_v39 = vadd.f32 %v1274_v38, %v1266_v5 }
0x2231   :  { %1838 = vtanh.f32 %v1276_v39 }
0x223e   :  { %v1839_v40 = vpop.eup %1838 }
0x223f   :  { %1279 = vrot.lane.b32.xlu1 %v1839_v40, %s1859_s23 }
0x22b1   :  { %v1280_v41 = vpop.permute.xlu1 %1279 }
0x22b2   :  { %v1282_v42 = vmul.f32 %v1837_v1, %v1280_v41 }
0x22b4   :  { %v1283_v43 = vpack.c.bf16 %v1282_v42, %v1282_v42 }
0x22b6   :  { %1285 = vrot.lane.b32.xlu0 %v1283_v43, %s1860_s3 }
0x2328   :  { %v1286_v44 = vpop.permute.xlu0 %1285 }
0x2329   :  { %1704 = vmatmul.mubr.msk.bf16.vlgmr.msra.gmra.mxu0 %vm153_vm3, %v1286_v44 }
0x23e9   :  { %v1324_v36 = vpop.f32.mrf.mxu0 }
0x23ea   :  { %v1330_v46 = vadd.f32 %v1324_v36, %v840_v45 }
0x23eb   :  { %v1705_v47 = vpop.f32.mrf.mxu0 }
0x23ec   :  { %1840 = vtanh.f32 %v1330_v46  ;;  %v1501_v2 = vmul.f32 -1.442695, %v1330_v46 }
0x23ed   :  { %v1327_v48 = vpop.f32.mrf.mxu0 }
0x23ee   :  { %1842 = vpow2.f32 %v1501_v2 }
0x23ef   :  { %v1706_v49 = vpop.f32.mrf.mxu0 }
0x23f9   :  { %v1841_v51 = vpop.eup %1840 }
0x23fa   :  { %1340 = vrot.lane.b32.xlu1 %v1841_v51, %s1859_s23 }
0x23fb   :  { %v1843_v53 = vpop.eup %1842 }
0x23fc   :  { %v1334_v54 = vadd.f32 1.0, %v1843_v53 }
0x23fe   :  { %1844 = vrcp.f32 %v1334_v54 }
0x240b   :  { %v1845_v55 = vpop.eup %1844 }
0x240c   :  { %v1338_v60 = vmul.f32 %v1845_v55, %v1276_v39 }
0x246c   :  { %v1341_v52 = vpop.permute.xlu1 %1340 }
0x246d   :  { %v1343_v56 = vmul.f32 %v1845_v55, %v1341_v52 }
0x246f   :  { %1345 = vrot.lane.b32.xlu0 %v1343_v56, %s1860_s3 }
0x24e1   :  { %v1346_v57 = vpop.permute.xlu0 %1345 }
0x24e2   :  { %v1348_v58 = vadd.f32 %v1346_v57, %v1338_v60 }
0x24e4   :  { %1846 = vtanh.f32 %v1348_v58 }
0x24f1   :  { %v1847_v59 = vpop.eup %1846 }
0x24f2   :  { %1351 = vrot.lane.b32.xlu1 %v1847_v59, %s1859_s23 }
0x2564   :  { %v1352_v17 = vpop.permute.xlu1 %1351 }
0x2565   :  { %v1354_v37 = vmul.f32 %v1845_v55, %v1352_v17 }
0x2567   :  { %v1355_v61 = vpack.c.bf16 %v1354_v37, %v1354_v37 }
0x2569   :  { %1357 = vrot.lane.b32.xlu0 %v1355_v61, %s1860_s3 }
0x25db   :  { %v1358_v63 = vpop.permute.xlu0 %1357 }
0x25dc   :  { %1712 = vmatmul.mubr.msk.bf16.vlgmr.msra.gmra.mxu1 %vm153_vm3, %v1358_v63 }
0x269c   :  { %v1396_v62 = vpop.f32.mrf.mxu1 }
0x269d   :  { %v1402_v28 = vadd.f32 %v1396_v62, %v843_v0 }
0x269e   :  { %v1713_v50 = vpop.f32.mrf.mxu1 }
0x269f   :  { %1848 = vtanh.f32 %v1402_v28  ;;  %v1503_v9 = vmul.f32 -1.442695, %v1402_v28 }
0x26a0   :  { %v1399_v8 = vpop.f32.mrf.mxu1 }
0x26a1   :  { %1850 = vpow2.f32 %v1503_v9 }
0x26a2   :  { %v1714_v11 = vpop.f32.mrf.mxu1 }
0x26ac   :  { %v1849_v4 = vpop.eup %1848 }
0x26ad   :  { %1412 = vrot.lane.b32.xlu1 %v1849_v4, %s1859_s23 }
0x26ae   :  { %v1851_v16 = vpop.eup %1850 }
0x26af   :  { %v1406_v18 = vadd.f32 1.0, %v1851_v16 }
0x26b1   :  { %1852 = vrcp.f32 %v1406_v18 }
0x26be   :  { %v1853_v19 = vpop.eup %1852 }
0x26bf   :  { %v1410_v13 = vmul.f32 %v1853_v19, %v1348_v58 }
0x271f   :  { %v1413_v20 = vpop.permute.xlu1 %1412 }
0x2720   :  { %v1415_v21 = vmul.f32 %v1853_v19, %v1413_v20 }
0x2722   :  { %1417 = vrot.lane.b32.xlu0 %v1415_v21, %s1860_s3 }
0x2726   :  { %1433 = vrot.lane.b32.xlu0 %v1504_v15, %s1861_s18 }
0x2794   :  { %v1418_v22 = vpop.permute.xlu0 %1417 }
0x2795   :  { %v1420_v23 = vadd.f32 %v1418_v22, %v1410_v13 }
0x2797   :  { %1854 = vtanh.f32 %v1420_v23 }
0x2798   :  { %v1434_v3 = vpop.permute.xlu0 %1433 }
0x27a4   :  { %v1855_v12 = vpop.eup %1854 }
0x27a5   :  { %1423 = vrot.lane.b32.xlu1 %v1855_v12, %s1859_s23 }
0x2817   :  { %v1424_v25 = vpop.permute.xlu1 %1423 }
0x2818   :  { %v1426_v26 = vmul.f32 %v1853_v19, %v1424_v25 }
0x281a   :  { %v1436_v27 = vmul.f32 %v1434_v3, %v1426_v26 }
0x281c   :  { %1438 = vrot.lane.b32.xlu1 %v1436_v27, %s1860_s3 }
0x288e   :  { %v1439_v10 = vpop.permute.xlu1 %1438 }
0x288f   :  { %v1441_v29 = vsel %vm153_vm3, %v1439_v10, 0.0 }
0x2890   :  { %1442 = vadd.xlane.f32.xlu0 %v1441_v29 }
0x2919   :  { %v1443_v6 = vpop.xlane.xlu0 %1442 }
0x291a   :  { %v1451_v31 = vadd.f32 %v1505_v30, %v1443_v6 }
0x291c   :  { %1453 = vst.msk [vmem:[%s2272_s9] sm:$0xff] %vm1452_vm4, %v1451_v31 }

</bundles_post_ra>
